<compile_context>
chip_gen: v7x
topology: tpu7x:2x2x1
jax: 0.10.0
libtpu: 0.0.40
codegen_flags: <defaults>
</compile_context>

<pallas_src>
import functools
import numpy as np
import jax
import jax.numpy as jnp
from jax.experimental import pallas as pl
from jax.experimental.pallas import tpu as pltpu


# ----------------------------- Pallas kernel ------------------------------ #

def _fused_gemm_kernel(x_ref, w_ref, shift_ref, o_ref, acc_ref, *, act):
    """Tiled GEMM with f32 accumulator; epilogue = +shift, activation."""
    k = pl.program_id(2)

    @pl.when(k == 0)
    def _():
        acc_ref[...] = jnp.zeros_like(acc_ref)

    acc_ref[...] += jnp.dot(x_ref[...], w_ref[...],
                            preferred_element_type=jnp.float32)

    @pl.when(k == pl.num_programs(2) - 1)
    def _():
        y = acc_ref[...] + shift_ref[...]          # BN scale folded into weights
        if act == "leaky":                          # LeakyReLU(0.2)
            y = jnp.where(y >= 0, y, 0.2 * y)
        elif act == "sigmoid":
            # exp and approx reciprocal both run on the EUP slot (VPU stays
            # free in the writeback phase); clip guards approx overshoot.
            y = pl.reciprocal(1.0 + jnp.exp(-y), approx=True)
            y = jnp.clip(y, 0.0, 1.0)
        # act == "none": identity
        o_ref[...] = y.astype(o_ref.dtype)


def _round_up(x, m):
    return ((x + m - 1) // m) * m


def fused_gemm(x, w, shift, act, *, out_dtype=jnp.float32,
               tm=256, tn=256, tk=512):
    """act((x @ w) + shift) with bf16 MXU inputs and f32 accumulation.

    x: (M, K), w: (K, N), shift: (N,).  Operands are zero-padded to tile
    multiples (M -> 16-aligned sublanes, K/N -> 128-aligned lanes); padding is
    sliced off the result, so partial tiles are handled exactly.
    """
    M, K = x.shape
    K2, N = w.shape
    assert K == K2, (K, K2)

    # Adaptive tile sizes: shrink to the (aligned) problem when it is small.
    tm = min(tm, _round_up(M, 16))     # bf16 sublane packing
    tk = min(tk, _round_up(K, 128))    # lane dim of A / sublane of B
    tn = min(tn, _round_up(N, 128))    # lane dim of B / output

    Mp, Kp, Np = _round_up(M, tm), _round_up(K, tk), _round_up(N, tn)

    xp = x.astype(jnp.bfloat16)
    wp = w.astype(jnp.bfloat16)
    if (Mp, Kp) != (M, K):
        xp = jnp.pad(xp, ((0, Mp - M), (0, Kp - K)))
    if (Kp, Np) != (K, N):
        wp = jnp.pad(wp, ((0, Kp - K), (0, Np - N)))
    sp = shift.astype(jnp.float32).reshape(1, N)
    if Np != N:
        sp = jnp.pad(sp, ((0, 0), (0, Np - N)))

    grid = (Mp // tm, Np // tn, Kp // tk)

    out_bytes = jnp.dtype(out_dtype).itemsize
    cost = pl.CostEstimate(
        flops=2 * Mp * Kp * Np,
        transcendentals=Mp * Np if act == "sigmoid" else 0,
        bytes_accessed=(Mp * Kp * 2 * grid[1] + Kp * Np * 2 * grid[0]
                        + Mp * Np * out_bytes),
    )

    kernel = functools.partial(_fused_gemm_kernel, act=act)
    out = pl.pallas_call(
        kernel,
        out_shape=jax.ShapeDtypeStruct((Mp, Np), out_dtype),
        grid=grid,
        in_specs=[
            pl.BlockSpec((tm, tk), lambda i, j, k: (i, k)),
            pl.BlockSpec((tk, tn), lambda i, j, k: (k, j)),
            pl.BlockSpec((1, tn), lambda i, j, k: (0, j)),
        ],
        out_specs=pl.BlockSpec((tm, tn), lambda i, j, k: (i, j)),
        scratch_shapes=[pltpu.VMEM((tm, tn), jnp.float32)],
        compiler_params=pltpu.CompilerParams(
            dimension_semantics=("parallel", "parallel", "arbitrary"),
            vmem_limit_bytes=32 * 1024 * 1024,
        ),
        cost_estimate=cost,
    )(xp, wp, sp)

    if (Mp, Np) != (M, N):
        out = out[:M, :N]
    return out


# ------------------------------ JAX glue ---------------------------------- #

def im2col(x_nhwc, ksize, stride, pad):
    """Extract conv patches (K ordering = (kh, kw, cin)).

    When the conv collapses to a single output pixel (stride-1 'valid' with
    Hp == Wp == ksize, i.e. the last layer), this is a pure reshape with no
    patch duplication at all.
    """
    B, H, W, C = x_nhwc.shape
    if pad > 0:
        x_nhwc = jnp.pad(x_nhwc, ((0, 0), (pad, pad), (pad, pad), (0, 0)))
    Hp, Wp = H + 2 * pad, W + 2 * pad
    OH = (Hp - ksize) // stride + 1
    OW = (Wp - ksize) // stride + 1

    if stride == 1 and OH == 1 and OW == 1:
        return x_nhwc.reshape(B, ksize * ksize * C), (B, OH, OW)

    slabs = []
    for kh in range(ksize):
        for kw in range(ksize):
            slabs.append(
                x_nhwc[:, kh:kh + stride * OH:stride, kw:kw + stride * OW:stride, :]
            )
    p = jnp.stack(slabs, axis=3)                       # (B, OH, OW, KH*KW, C)
    p = p.reshape(B * OH * OW, ksize * ksize * C)      # (kh, kw, cin) order
    return p, (B, OH, OW)


def conv_bn_layer(x_nhwc, layer):
    """Conv2d + BatchNorm2d (+ optional LeakyReLU) as one fused tiled GEMM."""
    patches, (B, OH, OW) = im2col(x_nhwc, layer["ksize"],
                                  layer["stride"], layer["pad"])
    cout = layer["wm"].shape[1]
    y = fused_gemm(patches, layer["wm"], layer["shift"], layer["act"],
                   out_dtype=jnp.bfloat16)
    return y.reshape(B, OH, OW, cout)                  # stay NHWC


def key_decoder_1024_forward(x_nchw, params):
    # Single NCHW -> NHWC transpose at the input; NHWC + bf16 throughout.
    out = jnp.transpose(x_nchw, (0, 2, 3, 1)).astype(jnp.bfloat16)
    for layer in params["convs"]:
        out = conv_bn_layer(out, layer)
    B = out.shape[0]
    out = out.reshape(B, -1)                           # final spatial is 1x1
    fc = params["fc"]
    key = fused_gemm(out, fc["wm"], fc["shift"], act="sigmoid",
                     out_dtype=jnp.float32)
    return key


# --------------------------- parameters ------------------------------------ #

def init_raw_params(key, nc, size, dim):
    """PyTorch-shaped parameters (Conv2d default bias=True, BN running stats)."""
    nf = 64
    n_layer = int(np.log(size) / np.log(2)) - 1
    specs = [(nc, nf, 2, 1, "leaky")]
    if n_layer > 2:
        for i in range(n_layer - 2):
            specs.append((min(2 ** i, 8) * nf, min(2 ** (i + 1), 8) * nf,
                          2, 1, "leaky"))
    specs.append((min(2 ** (n_layer - 2), 8) * nf, dim, 1, 0, "none"))

    convs = []
    for (cin, cout, stride, pad, act) in specs:
        key, kw_, kb_, kg_, kbe_, km_, kv_ = jax.random.split(key, 7)
        convs.append(dict(
            w=0.05 * jax.random.normal(kw_, (cout, cin, 4, 4), jnp.float32),
            b=0.05 * jax.random.normal(kb_, (cout,), jnp.float32),
            gamma=1.0 + 0.1 * jax.random.normal(kg_, (cout,), jnp.float32),
            beta=0.05 * jax.random.normal(kbe_, (cout,), jnp.float32),
            mean=0.05 * jax.random.normal(km_, (cout,), jnp.float32),
            var=1.0 + 0.1 * jnp.abs(jax.random.normal(kv_, (cout,), jnp.float32)),
            stride=stride, pad=pad, act=act,
        ))

    key, kfw, kfb = jax.random.split(key, 3)
    fc = dict(
        w=0.05 * jax.random.normal(kfw, (1024, dim), jnp.float32),
        b=0.05 * jax.random.normal(kfb, (1024,), jnp.float32),
    )
    return dict(convs=convs, fc=fc)


def prepare_params(raw):
    """Fold BN (eval mode) into GEMM weights/shift; cast weights to bf16."""
    convs = []
    for layer in raw["convs"]:
        cout = layer["w"].shape[0]
        # PyTorch weight (Cout, Cin, KH, KW) -> (KH*KW*Cin, Cout), matching
        # the im2col K ordering (kh, kw, cin).
        wm = jnp.transpose(layer["w"], (2, 3, 1, 0)).reshape(-1, cout)
        s = layer["gamma"] / jnp.sqrt(layer["var"] + 1e-5)
        # Conv bias exists in the reference (nn.Conv2d default bias=True); it
        # and the BN statistics fold into the additive shift, BN scale folds
        # into the weights (constants, done once outside the hot loop).
        wm = (wm * s[None, :]).astype(jnp.bfloat16)
        shift = ((layer["b"] - layer["mean"]) * s + layer["beta"]).astype(jnp.float32)
        convs.append(dict(wm=wm, shift=shift, stride=layer["stride"],
                          pad=layer["pad"], act=layer["act"], ksize=4))
    fc = dict(wm=jnp.transpose(raw["fc"]["w"]).astype(jnp.bfloat16),  # (dim, 1024)
              shift=raw["fc"]["b"].astype(jnp.float32))
    return dict(convs=convs, fc=fc)


# --------------------------------- main ------------------------------------ #

if __name__ == "__main__":
    nc, size, dim = 3, 16, 32          # small shapes; spatial 16 -> 8 -> 4 -> 1
    root = jax.random.PRNGKey(0)
    kx, kp = jax.random.split(root)
    x = jax.random.normal(kx, (2, nc, size, size), jnp.float32)
    params = prepare_params(init_raw_params(kp, nc, size, dim))

    fwd = jax.jit(lambda inp: key_decoder_1024_forward(inp, params))
    key_out = jax.block_until_ready(fwd(x))

    assert key_out.shape == (2, 1024), key_out.shape
    assert bool(jnp.all(jnp.isfinite(key_out)))
    assert bool(jnp.all((key_out >= 0.0) & (key_out <= 1.0)))
    print("KERNEL_OK")
</pallas_src>

<mosaic_0001>
module attributes {stable_mosaic.version = 11 : i64} {
  func.func @_fused_gemm_kernel(%arg0: i32, %arg1: i32, %arg2: i32, %arg3: memref<128x128xbf16, #tpu.memory_space<vmem>>, %arg4: memref<128x128xbf16, #tpu.memory_space<vmem>>, %arg5: memref<1x128xf32, #tpu.memory_space<vmem>>, %arg6: memref<128x128xbf16, #tpu.memory_space<vmem>>, %arg7: memref<128x128xf32, #tpu.memory_space<vmem>>) attributes {dimension_semantics = [#tpu.dimension_semantics<parallel>, #tpu.dimension_semantics<parallel>, #tpu.dimension_semantics<arbitrary>], iteration_bounds = array<i64: 1, 1, 1>, scalar_prefetch = 0 : i64, scratch_operands = 1 : i64, tpu.core_type = #tpu.core_type<tc>, window_params = [{transform_indices = @transform_0, window_bounds = array<i64: 128, 128>}, {transform_indices = @transform_1, window_bounds = array<i64: 128, 128>}, {transform_indices = @transform_2, window_bounds = array<i64: 1, 128>}, {transform_indices = @transform_3, window_bounds = array<i64: 128, 128>}]} {
    %c0_i32 = arith.constant 0 : i32
    %0 = arith.cmpi eq, %arg2, %c0_i32 : i32
    %1 = arith.extui %0 : i1 to i32
    %c0_i32_0 = arith.constant 0 : i32
    %2 = arith.cmpi ne, %1, %c0_i32_0 : i32
    scf.if %2 {
      %cst_10 = arith.constant 0.000000e+00 : f32
      %12 = vector.broadcast %cst_10 : f32 to vector<128x128xf32>
      %c0_11 = arith.constant 0 : index
      %c0_12 = arith.constant 0 : index
      %13 = vector.load %arg7[%c0_11, %c0_12] : memref<128x128xf32, #tpu.memory_space<vmem>>, vector<128x128xf32>
      tpu.vector_store %arg7[%c0_11, %c0_12], %12 {strides = array<i32>} : memref<128x128xf32, #tpu.memory_space<vmem>>, vector<128x128xf32>,
    } else {
    }
    %c0 = arith.constant 0 : index
    %c0_1 = arith.constant 0 : index
    %3 = vector.load %arg7[%c0, %c0_1] : memref<128x128xf32, #tpu.memory_space<vmem>>, vector<128x128xf32>
    %c0_2 = arith.constant 0 : index
    %c0_3 = arith.constant 0 : index
    %4 = vector.load %arg3[%c0_2, %c0_3] : memref<128x128xbf16, #tpu.memory_space<vmem>>, vector<128x128xbf16>
    %c0_4 = arith.constant 0 : index
    %c0_5 = arith.constant 0 : index
    %5 = vector.load %arg4[%c0_4, %c0_5] : memref<128x128xbf16, #tpu.memory_space<vmem>>, vector<128x128xbf16>
    %cst = arith.constant dense<0.000000e+00> : vector<128x128xf32>
    %6 = tpu.matmul %4, %5, %cst {dimension_numbers = #tpu.dot_dimension_numbers<[1], [0], [0], [1], [0, 0, 1, 1], [], []>} : vector<128x128xbf16>, vector<128x128xbf16>, vector<128x128xf32> -> vector<128x128xf32>
    %7 = arith.addf %3, %6 : vector<128x128xf32>
    %c0_6 = arith.constant 0 : index
    %c0_7 = arith.constant 0 : index
    %8 = vector.load %arg7[%c0_6, %c0_7] : memref<128x128xf32, #tpu.memory_space<vmem>>, vector<128x128xf32>
    tpu.vector_store %arg7[%c0_6, %c0_7], %7 {strides = array<i32>} : memref<128x128xf32, #tpu.memory_space<vmem>>, vector<128x128xf32>,
    %c0_i32_8 = arith.constant 0 : i32
    %9 = arith.cmpi eq, %arg2, %c0_i32_8 : i32
    %10 = arith.extui %9 : i1 to i32
    %c0_i32_9 = arith.constant 0 : i32
    %11 = arith.cmpi ne, %10, %c0_i32_9 : i32
    scf.if %11 {
      %c0_10 = arith.constant 0 : index
      %c0_11 = arith.constant 0 : index
      %12 = vector.load %arg7[%c0_10, %c0_11] : memref<128x128xf32, #tpu.memory_space<vmem>>, vector<128x128xf32>
      %c0_12 = arith.constant 0 : index
      %c0_13 = arith.constant 0 : index
      %13 = vector.load %arg5[%c0_12, %c0_13] : memref<1x128xf32, #tpu.memory_space<vmem>>, vector<1x128xf32>
      %14 = vector.broadcast %13 : vector<1x128xf32> to vector<128x128xf32>
      %15 = arith.addf %12, %14 : vector<128x128xf32>
      %cst_14 = arith.constant 0.000000e+00 : f32
      %16 = vector.broadcast %cst_14 : f32 to vector<128x128xf32>
      %17 = arith.cmpf oge, %15, %16 : vector<128x128xf32>
      %cst_15 = arith.constant 2.000000e-01 : f32
      %18 = vector.broadcast %cst_15 : f32 to vector<128x128xf32>
      %19 = arith.mulf %18, %15 : vector<128x128xf32>
      %20 = arith.select %17, %15, %19 : vector<128x128xi1>, vector<128x128xf32>
      %21 = arith.truncf %20 : vector<128x128xf32> to vector<128x128xbf16>
      %c0_16 = arith.constant 0 : index
      %c0_17 = arith.constant 0 : index
      %22 = vector.load %arg6[%c0_16, %c0_17] : memref<128x128xbf16, #tpu.memory_space<vmem>>, vector<128x128xbf16>
      tpu.vector_store %arg6[%c0_16, %c0_17], %21 {strides = array<i32>} : memref<128x128xbf16, #tpu.memory_space<vmem>>, vector<128x128xbf16>,
    } else {
    }
    return
  }
  func.func @transform_0(%arg0: i32, %arg1: i32, %arg2: i32) -> (i32, i32) {
    %c0_i32 = arith.constant 0 : i32
    return %arg0, %arg2 : i32, i32
  }
  func.func @transform_1(%arg0: i32, %arg1: i32, %arg2: i32) -> (i32, i32) {
    %c0_i32 = arith.constant 0 : i32
    return %arg2, %arg1 : i32, i32
  }
  func.func @transform_2(%arg0: i32, %arg1: i32, %arg2: i32) -> (i32, i32) {
    %c0_i32 = arith.constant 0 : i32
    %c0_i32_0 = arith.constant 0 : i32
    return %c0_i32, %arg1 : i32, i32
  }
  func.func @transform_3(%arg0: i32, %arg1: i32, %arg2: i32) -> (i32, i32) {
    %c0_i32 = arith.constant 0 : i32
    return %arg0, %arg1 : i32, i32
  }
}

module attributes {stable_mosaic.version = 11 : i64} {
  func.func @_fused_gemm_kernel(%arg0: i32, %arg1: i32, %arg2: i32, %arg3: memref<32x512xbf16, #tpu.memory_space<vmem>>, %arg4: memref<512x128xbf16, #tpu.memory_space<vmem>>, %arg5: memref<1x128xf32, #tpu.memory_space<vmem>>, %arg6: memref<32x128xbf16, #tpu.memory_space<vmem>>, %arg7: memref<32x128xf32, #tpu.memory_space<vmem>>) attributes {dimension_semantics = [#tpu.dimension_semantics<parallel>, #tpu.dimension_semantics<parallel>, #tpu.dimension_semantics<arbitrary>], iteration_bounds = array<i64: 1, 1, 2>, scalar_prefetch = 0 : i64, scratch_operands = 1 : i64, tpu.core_type = #tpu.core_type<tc>, window_params = [{transform_indices = @transform_0, window_bounds = array<i64: 32, 512>}, {transform_indices = @transform_1, window_bounds = array<i64: 512, 128>}, {transform_indices = @transform_2, window_bounds = array<i64: 1, 128>}, {transform_indices = @transform_3, window_bounds = array<i64: 32, 128>}]} {
    %c0_i32 = arith.constant 0 : i32
    %0 = arith.cmpi eq, %arg2, %c0_i32 : i32
    %1 = arith.extui %0 : i1 to i32
    %c0_i32_0 = arith.constant 0 : i32
    %2 = arith.cmpi ne, %1, %c0_i32_0 : i32
    scf.if %2 {
      %cst_9 = arith.constant 0.000000e+00 : f32
      %12 = vector.broadcast %cst_9 : f32 to vector<32x128xf32>
      %c0_10 = arith.constant 0 : index
      %c0_11 = arith.constant 0 : index
      %13 = vector.load %arg7[%c0_10, %c0_11] : memref<32x128xf32, #tpu.memory_space<vmem>>, vector<32x128xf32>
      tpu.vector_store %arg7[%c0_10, %c0_11], %12 {strides = array<i32>} : memref<32x128xf32, #tpu.memory_space<vmem>>, vector<32x128xf32>,
    } else {
    }
    %c0 = arith.constant 0 : index
    %c0_1 = arith.constant 0 : index
    %3 = vector.load %arg7[%c0, %c0_1] : memref<32x128xf32, #tpu.memory_space<vmem>>, vector<32x128xf32>
    %c0_2 = arith.constant 0 : index
    %c0_3 = arith.constant 0 : index
    %4 = vector.load %arg3[%c0_2, %c0_3] : memref<32x512xbf16, #tpu.memory_space<vmem>>, vector<32x512xbf16>
    %c0_4 = arith.constant 0 : index
    %c0_5 = arith.constant 0 : index
    %5 = vector.load %arg4[%c0_4, %c0_5] : memref<512x128xbf16, #tpu.memory_space<vmem>>, vector<512x128xbf16>
    %cst = arith.constant dense<0.000000e+00> : vector<32x128xf32>
    %6 = tpu.matmul %4, %5, %cst {dimension_numbers = #tpu.dot_dimension_numbers<[1], [0], [0], [1], [0, 0, 1, 1], [], []>} : vector<32x512xbf16>, vector<512x128xbf16>, vector<32x128xf32> -> vector<32x128xf32>
    %7 = arith.addf %3, %6 : vector<32x128xf32>
    %c0_6 = arith.constant 0 : index
    %c0_7 = arith.constant 0 : index
    %8 = vector.load %arg7[%c0_6, %c0_7] : memref<32x128xf32, #tpu.memory_space<vmem>>, vector<32x128xf32>
    tpu.vector_store %arg7[%c0_6, %c0_7], %7 {strides = array<i32>} : memref<32x128xf32, #tpu.memory_space<vmem>>, vector<32x128xf32>,
    %c1_i32 = arith.constant 1 : i32
    %9 = arith.cmpi eq, %arg2, %c1_i32 : i32
    %10 = arith.extui %9 : i1 to i32
    %c0_i32_8 = arith.constant 0 : i32
    %11 = arith.cmpi ne, %10, %c0_i32_8 : i32
    scf.if %11 {
      %c0_9 = arith.constant 0 : index
      %c0_10 = arith.constant 0 : index
      %12 = vector.load %arg7[%c0_9, %c0_10] : memref<32x128xf32, #tpu.memory_space<vmem>>, vector<32x128xf32>
      %c0_11 = arith.constant 0 : index
      %c0_12 = arith.constant 0 : index
      %13 = vector.load %arg5[%c0_11, %c0_12] : memref<1x128xf32, #tpu.memory_space<vmem>>, vector<1x128xf32>
      %14 = vector.broadcast %13 : vector<1x128xf32> to vector<32x128xf32>
      %15 = arith.addf %12, %14 : vector<32x128xf32>
      %cst_13 = arith.constant 0.000000e+00 : f32
      %16 = vector.broadcast %cst_13 : f32 to vector<32x128xf32>
      %17 = arith.cmpf oge, %15, %16 : vector<32x128xf32>
      %cst_14 = arith.constant 2.000000e-01 : f32
      %18 = vector.broadcast %cst_14 : f32 to vector<32x128xf32>
      %19 = arith.mulf %18, %15 : vector<32x128xf32>
      %20 = arith.select %17, %15, %19 : vector<32x128xi1>, vector<32x128xf32>
      %21 = arith.truncf %20 : vector<32x128xf32> to vector<32x128xbf16>
      %c0_15 = arith.constant 0 : index
      %c0_16 = arith.constant 0 : index
      %22 = vector.load %arg6[%c0_15, %c0_16] : memref<32x128xbf16, #tpu.memory_space<vmem>>, vector<32x128xbf16>
      tpu.vector_store %arg6[%c0_15, %c0_16], %21 {strides = array<i32>} : memref<32x128xbf16, #tpu.memory_space<vmem>>, vector<32x128xbf16>,
    } else {
    }
    return
  }
  func.func @transform_0(%arg0: i32, %arg1: i32, %arg2: i32) -> (i32, i32) {
    %c0_i32 = arith.constant 0 : i32
    return %arg0, %arg2 : i32, i32
  }
  func.func @transform_1(%arg0: i32, %arg1: i32, %arg2: i32) -> (i32, i32) {
    %c0_i32 = arith.constant 0 : i32
    return %arg2, %arg1 : i32, i32
  }
  func.func @transform_2(%arg0: i32, %arg1: i32, %arg2: i32) -> (i32, i32) {
    %c0_i32 = arith.constant 0 : i32
    %c0_i32_0 = arith.constant 0 : i32
    return %c0_i32, %arg1 : i32, i32
  }
  func.func @transform_3(%arg0: i32, %arg1: i32, %arg2: i32) -> (i32, i32) {
    %c0_i32 = arith.constant 0 : i32
    return %arg0, %arg1 : i32, i32
  }
}

module attributes {stable_mosaic.version = 11 : i64} {
  func.func @_fused_gemm_kernel(%arg0: i32, %arg1: i32, %arg2: i32, %arg3: memref<16x512xbf16, #tpu.memory_space<vmem>>, %arg4: memref<512x128xbf16, #tpu.memory_space<vmem>>, %arg5: memref<1x128xf32, #tpu.memory_space<vmem>>, %arg6: memref<16x128xbf16, #tpu.memory_space<vmem>>, %arg7: memref<16x128xf32, #tpu.memory_space<vmem>>) attributes {dimension_semantics = [#tpu.dimension_semantics<parallel>, #tpu.dimension_semantics<parallel>, #tpu.dimension_semantics<arbitrary>], iteration_bounds = array<i64: 1, 1, 4>, scalar_prefetch = 0 : i64, scratch_operands = 1 : i64, tpu.core_type = #tpu.core_type<tc>, window_params = [{transform_indices = @transform_0, window_bounds = array<i64: 16, 512>}, {transform_indices = @transform_1, window_bounds = array<i64: 512, 128>}, {transform_indices = @transform_2, window_bounds = array<i64: 1, 128>}, {transform_indices = @transform_3, window_bounds = array<i64: 16, 128>}]} {
    %c0_i32 = arith.constant 0 : i32
    %0 = arith.cmpi eq, %arg2, %c0_i32 : i32
    %1 = arith.extui %0 : i1 to i32
    %c0_i32_0 = arith.constant 0 : i32
    %2 = arith.cmpi ne, %1, %c0_i32_0 : i32
    scf.if %2 {
      %cst_9 = arith.constant 0.000000e+00 : f32
      %12 = vector.broadcast %cst_9 : f32 to vector<16x128xf32>
      %c0_10 = arith.constant 0 : index
      %c0_11 = arith.constant 0 : index
      %13 = vector.load %arg7[%c0_10, %c0_11] : memref<16x128xf32, #tpu.memory_space<vmem>>, vector<16x128xf32>
      tpu.vector_store %arg7[%c0_10, %c0_11], %12 {strides = array<i32>} : memref<16x128xf32, #tpu.memory_space<vmem>>, vector<16x128xf32>,
    } else {
    }
    %c0 = arith.constant 0 : index
    %c0_1 = arith.constant 0 : index
    %3 = vector.load %arg7[%c0, %c0_1] : memref<16x128xf32, #tpu.memory_space<vmem>>, vector<16x128xf32>
    %c0_2 = arith.constant 0 : index
    %c0_3 = arith.constant 0 : index
    %4 = vector.load %arg3[%c0_2, %c0_3] : memref<16x512xbf16, #tpu.memory_space<vmem>>, vector<16x512xbf16>
    %c0_4 = arith.constant 0 : index
    %c0_5 = arith.constant 0 : index
    %5 = vector.load %arg4[%c0_4, %c0_5] : memref<512x128xbf16, #tpu.memory_space<vmem>>, vector<512x128xbf16>
    %cst = arith.constant dense<0.000000e+00> : vector<16x128xf32>
    %6 = tpu.matmul %4, %5, %cst {dimension_numbers = #tpu.dot_dimension_numbers<[1], [0], [0], [1], [0, 0, 1, 1], [], []>} : vector<16x512xbf16>, vector<512x128xbf16>, vector<16x128xf32> -> vector<16x128xf32>
    %7 = arith.addf %3, %6 : vector<16x128xf32>
    %c0_6 = arith.constant 0 : index
    %c0_7 = arith.constant 0 : index
    %8 = vector.load %arg7[%c0_6, %c0_7] : memref<16x128xf32, #tpu.memory_space<vmem>>, vector<16x128xf32>
    tpu.vector_store %arg7[%c0_6, %c0_7], %7 {strides = array<i32>} : memref<16x128xf32, #tpu.memory_space<vmem>>, vector<16x128xf32>,
    %c3_i32 = arith.constant 3 : i32
    %9 = arith.cmpi eq, %arg2, %c3_i32 : i32
    %10 = arith.extui %9 : i1 to i32
    %c0_i32_8 = arith.constant 0 : i32
    %11 = arith.cmpi ne, %10, %c0_i32_8 : i32
    scf.if %11 {
      %c0_9 = arith.constant 0 : index
      %c0_10 = arith.constant 0 : index
      %12 = vector.load %arg7[%c0_9, %c0_10] : memref<16x128xf32, #tpu.memory_space<vmem>>, vector<16x128xf32>
      %c0_11 = arith.constant 0 : index
      %c0_12 = arith.constant 0 : index
      %13 = vector.load %arg5[%c0_11, %c0_12] : memref<1x128xf32, #tpu.memory_space<vmem>>, vector<1x128xf32>
      %14 = vector.broadcast %13 : vector<1x128xf32> to vector<16x128xf32>
      %15 = arith.addf %12, %14 : vector<16x128xf32>
      %16 = arith.truncf %15 : vector<16x128xf32> to vector<16x128xbf16>
      %c0_13 = arith.constant 0 : index
      %c0_14 = arith.constant 0 : index
      %17 = vector.load %arg6[%c0_13, %c0_14] : memref<16x128xbf16, #tpu.memory_space<vmem>>, vector<16x128xbf16>
      tpu.vector_store %arg6[%c0_13, %c0_14], %16 {strides = array<i32>} : memref<16x128xbf16, #tpu.memory_space<vmem>>, vector<16x128xbf16>,
    } else {
    }
    return
  }
  func.func @transform_0(%arg0: i32, %arg1: i32, %arg2: i32) -> (i32, i32) {
    %c0_i32 = arith.constant 0 : i32
    return %arg0, %arg2 : i32, i32
  }
  func.func @transform_1(%arg0: i32, %arg1: i32, %arg2: i32) -> (i32, i32) {
    %c0_i32 = arith.constant 0 : i32
    return %arg2, %arg1 : i32, i32
  }
  func.func @transform_2(%arg0: i32, %arg1: i32, %arg2: i32) -> (i32, i32) {
    %c0_i32 = arith.constant 0 : i32
    %c0_i32_0 = arith.constant 0 : i32
    return %c0_i32, %arg1 : i32, i32
  }
  func.func @transform_3(%arg0: i32, %arg1: i32, %arg2: i32) -> (i32, i32) {
    %c0_i32 = arith.constant 0 : i32
    return %arg0, %arg1 : i32, i32
  }
}

module attributes {stable_mosaic.version = 11 : i64} {
  func.func @_fused_gemm_kernel(%arg0: i32, %arg1: i32, %arg2: i32, %arg3: memref<16x128xbf16, #tpu.memory_space<vmem>>, %arg4: memref<128x256xbf16, #tpu.memory_space<vmem>>, %arg5: memref<1x256xf32, #tpu.memory_space<vmem>>, %arg6: memref<16x256xf32, #tpu.memory_space<vmem>>, %arg7: memref<16x256xf32, #tpu.memory_space<vmem>>) attributes {dimension_semantics = [#tpu.dimension_semantics<parallel>, #tpu.dimension_semantics<parallel>, #tpu.dimension_semantics<arbitrary>], iteration_bounds = array<i64: 1, 4, 1>, scalar_prefetch = 0 : i64, scratch_operands = 1 : i64, tpu.core_type = #tpu.core_type<tc>, window_params = [{transform_indices = @transform_0, window_bounds = array<i64: 16, 128>}, {transform_indices = @transform_1, window_bounds = array<i64: 128, 256>}, {transform_indices = @transform_2, window_bounds = array<i64: 1, 256>}, {transform_indices = @transform_3, window_bounds = array<i64: 16, 256>}]} {
    %c0_i32 = arith.constant 0 : i32
    %0 = arith.cmpi eq, %arg2, %c0_i32 : i32
    %1 = arith.extui %0 : i1 to i32
    %c0_i32_0 = arith.constant 0 : i32
    %2 = arith.cmpi ne, %1, %c0_i32_0 : i32
    scf.if %2 {
      %cst_10 = arith.constant 0.000000e+00 : f32
      %12 = vector.broadcast %cst_10 : f32 to vector<16x256xf32>
      %c0_11 = arith.constant 0 : index
      %c0_12 = arith.constant 0 : index
      %13 = vector.load %arg7[%c0_11, %c0_12] : memref<16x256xf32, #tpu.memory_space<vmem>>, vector<16x256xf32>
      tpu.vector_store %arg7[%c0_11, %c0_12], %12 {strides = array<i32>} : memref<16x256xf32, #tpu.memory_space<vmem>>, vector<16x256xf32>,
    } else {
    }
    %c0 = arith.constant 0 : index
    %c0_1 = arith.constant 0 : index
    %3 = vector.load %arg7[%c0, %c0_1] : memref<16x256xf32, #tpu.memory_space<vmem>>, vector<16x256xf32>
    %c0_2 = arith.constant 0 : index
    %c0_3 = arith.constant 0 : index
    %4 = vector.load %arg3[%c0_2, %c0_3] : memref<16x128xbf16, #tpu.memory_space<vmem>>, vector<16x128xbf16>
    %c0_4 = arith.constant 0 : index
    %c0_5 = arith.constant 0 : index
    %5 = vector.load %arg4[%c0_4, %c0_5] : memref<128x256xbf16, #tpu.memory_space<vmem>>, vector<128x256xbf16>
    %cst = arith.constant dense<0.000000e+00> : vector<16x256xf32>
    %6 = tpu.matmul %4, %5, %cst {dimension_numbers = #tpu.dot_dimension_numbers<[1], [0], [0], [1], [0, 0, 1, 1], [], []>} : vector<16x128xbf16>, vector<128x256xbf16>, vector<16x256xf32> -> vector<16x256xf32>
    %7 = arith.addf %3, %6 : vector<16x256xf32>
    %c0_6 = arith.constant 0 : index
    %c0_7 = arith.constant 0 : index
    %8 = vector.load %arg7[%c0_6, %c0_7] : memref<16x256xf32, #tpu.memory_space<vmem>>, vector<16x256xf32>
    tpu.vector_store %arg7[%c0_6, %c0_7], %7 {strides = array<i32>} : memref<16x256xf32, #tpu.memory_space<vmem>>, vector<16x256xf32>,
    %c0_i32_8 = arith.constant 0 : i32
    %9 = arith.cmpi eq, %arg2, %c0_i32_8 : i32
    %10 = arith.extui %9 : i1 to i32
    %c0_i32_9 = arith.constant 0 : i32
    %11 = arith.cmpi ne, %10, %c0_i32_9 : i32
    scf.if %11 {
      %c0_10 = arith.constant 0 : index
      %c0_11 = arith.constant 0 : index
      %12 = vector.load %arg7[%c0_10, %c0_11] : memref<16x256xf32, #tpu.memory_space<vmem>>, vector<16x256xf32>
      %c0_12 = arith.constant 0 : index
      %c0_13 = arith.constant 0 : index
      %13 = vector.load %arg5[%c0_12, %c0_13] : memref<1x256xf32, #tpu.memory_space<vmem>>, vector<1x256xf32>
      %14 = vector.broadcast %13 : vector<1x256xf32> to vector<16x256xf32>
      %15 = arith.addf %12, %14 : vector<16x256xf32>
      %cst_14 = arith.constant 0.000000e+00 : f32
      %16 = vector.broadcast %cst_14 : f32 to vector<16x256xf32>
      %17 = arith.subf %16, %15 : vector<16x256xf32>
      %18 = math.exp %17 : vector<16x256xf32>
      %cst_15 = arith.constant 1.000000e+00 : f32
      %19 = vector.broadcast %cst_15 : f32 to vector<16x256xf32>
      %20 = arith.addf %19, %18 : vector<16x256xf32>
      %21 = tpu.reciprocal %20 {approx = true} : vector<16x256xf32> -> vector<16x256xf32>
      %cst_16 = arith.constant 0.000000e+00 : f32
      %cst_17 = arith.constant 1.000000e+00 : f32
      %22 = vector.broadcast %cst_16 : f32 to vector<16x256xf32>
      %23 = arith.maximumf %22, %21 : vector<16x256xf32>
      %24 = vector.broadcast %cst_17 : f32 to vector<16x256xf32>
      %25 = arith.minimumf %24, %23 : vector<16x256xf32>
      %c0_18 = arith.constant 0 : index
      %c0_19 = arith.constant 0 : index
      %26 = vector.load %arg6[%c0_18, %c0_19] : memref<16x256xf32, #tpu.memory_space<vmem>>, vector<16x256xf32>
      tpu.vector_store %arg6[%c0_18, %c0_19], %25 {strides = array<i32>} : memref<16x256xf32, #tpu.memory_space<vmem>>, vector<16x256xf32>,
    } else {
    }
    return
  }
  func.func @transform_0(%arg0: i32, %arg1: i32, %arg2: i32) -> (i32, i32) {
    %c0_i32 = arith.constant 0 : i32
    return %arg0, %arg2 : i32, i32
  }
  func.func @transform_1(%arg0: i32, %arg1: i32, %arg2: i32) -> (i32, i32) {
    %c0_i32 = arith.constant 0 : i32
    return %arg2, %arg1 : i32, i32
  }
  func.func @transform_2(%arg0: i32, %arg1: i32, %arg2: i32) -> (i32, i32) {
    %c0_i32 = arith.constant 0 : i32
    %c0_i32_0 = arith.constant 0 : i32
    return %c0_i32, %arg1 : i32, i32
  }
  func.func @transform_3(%arg0: i32, %arg1: i32, %arg2: i32) -> (i32, i32) {
    %c0_i32 = arith.constant 0 : i32
    return %arg0, %arg1 : i32, i32
  }
}

</mosaic_0001>

<bundles_post_ra>
// kernel: _lambda_.4
= control target key start
LH: loop header
LB: loop body
LE: loop exit
PB: predicated region body
PF: predicated region fallthrough
CT: control target
= control target key end

     0   :  { %s775_s1 = inlined_call_operand.vmem [shape: bf16[128,128], index: 1, kind: input, shape index: {}]   ;;  %s776_s0 = inlined_call_operand.vmem [shape: bf16[128,128], index: 0, kind: input, shape index: {}]   ;;  %s777_s2 = inlined_call_operand.vmem [shape: f32[1,128], index: 2, kind: input, shape index: {}]   ;;  %s778_s3 = inlined_call_operand.vmem [shape: bf16[128,128], index: 3, kind: output, shape index: {}]  }
   0x1   :  { %v642_v0 = vld [vmem:[%s775_s1] sm:$0xff]   ;;  %v643_v1 = vld [vmem:[%s775_s1 + $0x8] sm:$0xff]   ;;  %v644_v2 = vld [vmem:[%s775_s1 + $0x10] sm:$0xff]  }
   0x2   :  { %594 = vmatprep.subr.bf16.mxu0 %v642_v0  ;;  %626 = vmatprep.subr.bf16.mxu1 %v642_v0  ;;  %v645_v3 = vld [vmem:[%s775_s1 + $0x18] sm:$0xff]   ;;  %v650_v4 = vld [vmem:[%s776_s0] sm:$0xff]   ;;  %v647_v7 = vld [vmem:[%s775_s1 + $0x28] sm:$0xff]  }
   0x3   :  { %595 = vmatpush3.bf16.msra.mxu0 %v642_v0  ;;  %634 = vmatpush3.bf16.msra.mxu1 %v642_v0  ;;  %v651_v5 = vld [vmem:[%s776_s0 + $0x20] sm:$0xff]   ;;  %v648_v8 = vld [vmem:[%s775_s1 + $0x30] sm:$0xff]   ;;  %v649_v9 = vld [vmem:[%s775_s1 + $0x38] sm:$0xff]  }
   0x4   :  { %596 = vmatprep.subr.bf16.mxu0 %v643_v1  ;;  %627 = vmatprep.subr.bf16.mxu1 %v643_v1  ;;  %v646_v6 = vld [vmem:[%s775_s1 + $0x20] sm:$0xff]   ;;  %v652_v10 = vld [vmem:[%s776_s0 + $0x8] sm:$0xff]   ;;  %v654_v12 = vld [vmem:[%s776_s0 + $0x10] sm:$0xff]  }
   0x5   :  { %610 = vmatprep.mubr.bf16.mxu0 %v650_v4  ;;  %618 = vmatprep.mubr.bf16.mxu1 %v651_v5  ;;  %v653_v11 = vld [vmem:[%s776_s0 + $0x28] sm:$0xff]   ;;  %v655_v13 = vld [vmem:[%s776_s0 + $0x30] sm:$0xff]   ;;  %v656_v14 = vld [vmem:[%s776_s0 + $0x18] sm:$0xff]  }
   0x6   :  { %v657_v15 = vld [vmem:[%s776_s0 + $0x38] sm:$0xff]   ;;  %v729_v16 = vld [vmem:[%s777_s2] ss:$0 sm:$0xff] }
   0x7   :  { %597 = vmatpush3.bf16.msra.mxu0 %v643_v1  ;;  %635 = vmatpush3.bf16.msra.mxu1 %v643_v1 }
   0x8   :  { %598 = vmatprep.subr.bf16.mxu0 %v644_v2  ;;  %628 = vmatprep.subr.bf16.mxu1 %v644_v2 }
   0xb   :  { %599 = vmatpush3.bf16.msra.mxu0 %v644_v2  ;;  %636 = vmatpush3.bf16.msra.mxu1 %v644_v2 }
   0xc   :  { %600 = vmatprep.subr.bf16.mxu0 %v645_v3  ;;  %629 = vmatprep.subr.bf16.mxu1 %v645_v3 }
   0xf   :  { %601 = vmatpush3.bf16.msra.mxu0 %v645_v3  ;;  %637 = vmatpush3.bf16.msra.mxu1 %v645_v3 }
  0x10   :  { %602 = vmatprep.subr.bf16.mxu0 %v646_v6  ;;  %630 = vmatprep.subr.bf16.mxu1 %v646_v6 }
  0x13   :  { %603 = vmatpush3.bf16.msra.mxu0 %v646_v6  ;;  %638 = vmatpush3.bf16.msra.mxu1 %v646_v6 }
  0x14   :  { %604 = vmatprep.subr.bf16.mxu0 %v647_v7  ;;  %631 = vmatprep.subr.bf16.mxu1 %v647_v7 }
  0x17   :  { %605 = vmatpush3.bf16.msra.mxu0 %v647_v7  ;;  %639 = vmatpush3.bf16.msra.mxu1 %v647_v7 }
  0x18   :  { %606 = vmatprep.subr.bf16.mxu0 %v648_v8  ;;  %632 = vmatprep.subr.bf16.mxu1 %v648_v8 }
  0x1b   :  { %607 = vmatpush3.bf16.msra.mxu0 %v648_v8  ;;  %640 = vmatpush3.bf16.msra.mxu1 %v648_v8 }
  0x1c   :  { %608 = vmatprep.subr.bf16.mxu0 %v649_v9  ;;  %633 = vmatprep.subr.bf16.mxu1 %v649_v9 }
  0x1f   :  { %609 = vmatpush3.bf16.msra.mxu0 %v649_v9  ;;  %641 = vmatpush3.bf16.msra.mxu1 %v649_v9 }
  0x22   :  { %611 = vmatmul.mubr.bf16.vlgmr.msra.gmra.mrb[0].mxu0 %v652_v10  ;;  %619 = vmatmul.mubr.bf16.vlgmr.msra.gmra.mrb[0].mxu1 %v653_v11 }
  0x23   :  { %614 = vmatprep.mubr.bf16.mxu0 %v654_v12  ;;  %622 = vmatprep.mubr.bf16.mxu1 %v655_v13 }
  0x2a   :  { %615 = vmatmul.mubr.bf16.gmra.mrb[4].mxu0 %v656_v14  ;;  %623 = vmatmul.mubr.bf16.gmra.mrb[4].mxu1 %v657_v15 }
  0xf5   :  { %v612_v17 = vpop.f32.mrb[0].mxu0  ;;  %v620_v18 = vpop.f32.mrb[0].mxu1 }
  0xf6   :  { %v336_v19 = vadd.f32 %v612_v17, %v729_v16  ;;  %v344_v20 = vadd.f32 %v620_v18, %v729_v16  ;;  %v213_v21 = vpop.f32.mrb[1].mxu0  ;;  %v245_v22 = vpop.f32.mrb[1].mxu1 }
  0xf7   :  { %v334_v23 = vadd.f32 %v729_v16, %v213_v21  ;;  %v342_v24 = vadd.f32 %v729_v16, %v245_v22  ;;  %v613_v25 = vpop.f32.mrb[2].mxu0  ;;  %v621_v26 = vpop.f32.mrb[2].mxu1 }
  0xf8   :  { %vm352_vm0 = vcmp.ge.f32.partialorder %v336_v19, 0.0  ;;  %v368_v27 = vmul.f32 0.2, %v336_v19  ;;  %vm360_vm1 = vcmp.ge.f32.partialorder %v344_v20, 0.0  ;;  %v376_v28 = vmul.f32 0.2, %v344_v20 }
  0xf9   :  { %vm350_vm2 = vcmp.ge.f32.partialorder %v334_v23, 0.0  ;;  %v366_v29 = vmul.f32 0.2, %v334_v23  ;;  %vm358_vm3 = vcmp.ge.f32.partialorder %v342_v24, 0.0  ;;  %v374_v30 = vmul.f32 0.2, %v342_v24 }
  0xfa   :  { %v337_v31 = vadd.f32 %v613_v25, %v729_v16  ;;  %v345_v32 = vadd.f32 %v621_v26, %v729_v16  ;;  %v216_v33 = vpop.f32.mrb[3].mxu0  ;;  %v248_v34 = vpop.f32.mrb[3].mxu1  ;;  %v384_v35 = vsel %vm352_vm0, %v336_v19, %v368_v27  ;;  %v392_v36 = vsel %vm360_vm1, %v344_v20, %v376_v28 }
  0xfb   :  { %v335_v37 = vadd.f32 %v729_v16, %v216_v33  ;;  %v343_v38 = vadd.f32 %v729_v16, %v248_v34  ;;  %v382_v43 = vsel %vm350_vm2, %v334_v23, %v366_v29  ;;  %v390_v44 = vsel %vm358_vm3, %v342_v24, %v374_v30 }
  0xfc   :  { %vm353_vm4 = vcmp.ge.f32.partialorder %v337_v31, 0.0  ;;  %v369_v39 = vmul.f32 0.2, %v337_v31  ;;  %vm361_vm5 = vcmp.ge.f32.partialorder %v345_v32, 0.0  ;;  %v377_v40 = vmul.f32 0.2, %v345_v32 }
  0xfd   :  { %vm351_vm6 = vcmp.ge.f32.partialorder %v335_v37, 0.0  ;;  %v367_v41 = vmul.f32 0.2, %v335_v37  ;;  %vm359_vm7 = vcmp.ge.f32.partialorder %v343_v38, 0.0  ;;  %v375_v42 = vmul.f32 0.2, %v343_v38 }
  0xfe   :  { %v385_v45 = vsel %vm353_vm4, %v337_v31, %v369_v39  ;;  %v393_v46 = vsel %vm361_vm5, %v345_v32, %v377_v40  ;;  %v616_v47 = vpop.f32.mrb[4].mxu0  ;;  %v624_v48 = vpop.f32.mrb[4].mxu1 }
  0xff   :  { %v539_v49 = vpack.c.bf16 %v385_v45, %v384_v35  ;;  %v559_v50 = vpack.c.bf16 %v393_v46, %v392_v36  ;;  %v383_v51 = vsel %vm351_vm6, %v335_v37, %v367_v41  ;;  %v391_v52 = vsel %vm359_vm7, %v343_v38, %v375_v42  ;;  %v229_v53 = vpop.f32.mrb[5].mxu0  ;;  %v261_v54 = vpop.f32.mrb[5].mxu1 }
 0x100   :  { %v534_v55 = vpack.c.bf16 %v383_v51, %v382_v43  ;;  %v554_v56 = vpack.c.bf16 %v391_v52, %v390_v44  ;;  %v340_v57 = vadd.f32 %v616_v47, %v729_v16  ;;  %v348_v58 = vadd.f32 %v624_v48, %v729_v16  ;;  %v617_v59 = vpop.f32.mrb[6].mxu0  ;;  %v625_v60 = vpop.f32.mrb[6].mxu1 }
 0x101   :  { %571 = vst [vmem:[%s778_s3 + $0x8] sm:$0xff] %v539_v49   ;;  %575 = vst [vmem:[%s778_s3 + $0x28] sm:$0xff] %v559_v50   ;;  %v338_v61 = vadd.f32 %v729_v16, %v229_v53  ;;  %v346_v62 = vadd.f32 %v729_v16, %v261_v54  ;;  %v341_v63 = vadd.f32 %v617_v59, %v729_v16  ;;  %v232_v1 = vpop.f32.mrb[7].mxu0  ;;  %v264_v2 = vpop.f32.mrb[7].mxu1 }
 0x102   :  { %v349_v0 = vadd.f32 %v625_v60, %v729_v16  ;;  %535 = vst [vmem:[%s778_s3] sm:$0xff] %v534_v55   ;;  %574 = vst [vmem:[%s778_s3 + $0x20] sm:$0xff] %v554_v56   ;;  %v372_v3 = vmul.f32 0.2, %v340_v57  ;;  %vm356_vm8 = vcmp.ge.f32.partialorder %v340_v57, 0.0  ;;  %v380_v4 = vmul.f32 0.2, %v348_v58 }
 0x103   :  { %vm364_vm9 = vcmp.ge.f32.partialorder %v348_v58, 0.0  ;;  %vm354_vm10 = vcmp.ge.f32.partialorder %v338_v61, 0.0  ;;  %vm357_vm11 = vcmp.ge.f32.partialorder %v341_v63, 0.0  ;;  %v373_v5 = vmul.f32 0.2, %v341_v63 }
 0x104   :  { %v370_v6 = vmul.f32 0.2, %v338_v61  ;;  %vm362_vm12 = vcmp.ge.f32.partialorder %v346_v62, 0.0  ;;  %vm365_vm13 = vcmp.ge.f32.partialorder %v349_v0, 0.0  ;;  %v381_v7 = vmul.f32 0.2, %v349_v0 }
 0x105   :  { %v388_v8 = vsel %vm356_vm8, %v340_v57, %v372_v3  ;;  %v389_v9 = vsel %vm357_vm11, %v341_v63, %v373_v5  ;;  %v339_v10 = vadd.f32 %v729_v16, %v232_v1  ;;  %v347_v11 = vadd.f32 %v729_v16, %v264_v2 }
 0x106   :  { %v396_v12 = vsel %vm364_vm9, %v348_v58, %v380_v4  ;;  %v378_v13 = vmul.f32 0.2, %v346_v62  ;;  %v549_v14 = vpack.c.bf16 %v389_v9, %v388_v8  ;;  %v397_v15 = vsel %vm365_vm13, %v349_v0, %v381_v7 }
 0x107   :  { %v569_v17 = vpack.c.bf16 %v397_v15, %v396_v12  ;;  %vm355_vm14 = vcmp.ge.f32.partialorder %v339_v10, 0.0  ;;  %v371_v18 = vmul.f32 0.2, %v339_v10  ;;  %vm363_vm15 = vcmp.ge.f32.partialorder %v347_v11, 0.0 }
 0x108   :  { %573 = vst [vmem:[%s778_s3 + $0x18] sm:$0xff] %v549_v14   ;;  %v379_v19 = vmul.f32 0.2, %v347_v11  ;;  %v386_v20 = vsel %vm354_vm10, %v338_v61, %v370_v6  ;;  %v394_v21 = vsel %vm362_vm12, %v346_v62, %v378_v13 }
 0x109   :  { %577 = vst [vmem:[%s778_s3 + $0x38] sm:$0xff] %v569_v17   ;;  %v387_v16 = vsel %vm355_vm14, %v339_v10, %v371_v18 }
 0x10a   :  { %v544_v22 = vpack.c.bf16 %v387_v16, %v386_v20  ;;  %v395_v23 = vsel %vm363_vm15, %v347_v11, %v379_v19 }
 0x10b   :  { %v564_v24 = vpack.c.bf16 %v395_v23, %v394_v21 }
 0x10c   :  { %572 = vst [vmem:[%s778_s3 + $0x10] sm:$0xff] %v544_v22  }
 0x10d   :  { %576 = vst [vmem:[%s778_s3 + $0x30] sm:$0xff] %v564_v24  }

// kernel: _lambda_.5
= control target key start
LH: loop header
LB: loop body
LE: loop exit
PB: predicated region body
PF: predicated region fallthrough
CT: control target
= control target key end

     0   :  { %s1152_s12 = smov 0   ;;  %s1154_s13 = smov 0   ;;  %s1272_s0 = inlined_call_operand.vmem [shape: bf16[32,1024], index: 0, kind: input, shape index: {}]   ;;  %s1273_s1 = inlined_call_operand.vmem [shape: bf16[1024,128], index: 1, kind: input, shape index: {}]   ;;  %s1274_s2 = inlined_call_operand.vmem [shape: f32[1,128], index: 2, kind: input, shape index: {}]   ;;  %s1275_s3 = inlined_call_operand.vmem [shape: bf16[32,128], index: 3, kind: output, shape index: {}]  }
   0x1   :  { %s1156_s14 = smov 0   ;;  %s1158_s15 = smov 0  }
   0x2   :  { %s1160_s16 = smov 0  }
   0x3 LB: > { %s25_s17 = sadd.s32 1, %s1125_s15  ;;  %p48_p1 = scmp.ne.s32.totalorder %s1117_s13, %s1113_s12  ;;  %s1129_s16 = sphi %s1160_s16, %s13_s16   ;;  %s1125_s15 = sphi %s1158_s15, %s1279_s15   ;;  %s1121_s14 = sphi %s1156_s14, %s1278_s14   ;;  %s1117_s13 = sphi %s1154_s13, %s1277_s13   ;;  %s1113_s12 = sphi %s1152_s12, %s1276_s12  }
   0x4   : > { %p26_p0 = scmp.ge.s32.totalorder %s25_s17, 2  ;;  %p49_p2 = scmp.eq.s32.totalorder %s1129_s16, 0 }
   0x5   : > { %s41_s19 = sadd.s32 1, %s1117_s13  ;;  %p875_p5 = scmp.ge.s32.totalorder %s1129_s16, 2 }
   0x6   : > { %s1281_s17 = smov (%p26_p0, %s25_s17), 0  ;;  %p50_p3 = por %p49_p2, %p48_p1 }
   0x7   : > { %s37_s18 = ssub.s32 %s1125_s15, %s1281_s17  ;;  %162 = sbr.rel (%p875_p5) target bundleno = 22 (0x16), region = 20 }
   0x8   : > { %p39_p4 = scmp.eq.s32.totalorder %s37_s18, 0 }
   0xa   : > { %s1187_s20 = scalar_select %p39_p4, %s1117_s13, %s41_s19  }
   0xe   : > { %165 = sbr.rel (!%p50_p3) target bundleno = 22 (0x16), region = 24  ;;  %s167_s21 = sand.u32 (%p50_p3), 1, %s1117_s13  }
   0xf   : > { %s934_s22 = sshll.u32 (%p50_p3), %s1125_s15, 4  ;;  %s876_s23 = sshll.u32 (%p50_p3), %s167_s21, 6 }
  0x10   : > { %s175_s26 = scalar_lea.vmem (%p50_p3), %s1272_s0, %s934_s22  ;;  %s169_s27 = scalar_lea.vmem (%p50_p3), [#allocation3], %s876_s23 }
  0x11   : > { %v188_v0 = vld [vmem:[%s175_s26] sm:$0xff] (%p50_p3)  ;;  %v190_v1 = vld [vmem:[%s175_s26 + $0x8] sm:$0xff] (%p50_p3) }
  0x12   : > { %v192_v2 = vld [vmem:[%s175_s26 + $0x20] sm:$0xff] (%p50_p3)  ;;  %189 = vst [vmem:[%s169_s27] sm:$0xff] (%p50_p3), %v188_v0  ;;  %191 = vst [vmem:[%s169_s27 + $0x8] sm:$0xff] (%p50_p3), %v190_v1  ;;  %v194_v3 = vld [vmem:[%s175_s26 + $0x28] sm:$0xff] (%p50_p3) }
  0x13   : > { %193 = vst [vmem:[%s169_s27 + $0x10] sm:$0xff] (%p50_p3), %v192_v2  ;;  %v196_v4 = vld [vmem:[%s175_s26 + $0x40] sm:$0xff] (%p50_p3)  ;;  %v198_v5 = vld [vmem:[%s175_s26 + $0x48] sm:$0xff] (%p50_p3)  ;;  %195 = vst [vmem:[%s169_s27 + $0x18] sm:$0xff] (%p50_p3), %v194_v3 }
  0x14   : > { %197 = vst [vmem:[%s169_s27 + $0x20] sm:$0xff] (%p50_p3), %v196_v4  ;;  %199 = vst [vmem:[%s169_s27 + $0x28] sm:$0xff] (%p50_p3), %v198_v5  ;;  %v200_v6 = vld [vmem:[%s175_s26 + $0x60] sm:$0xff] (%p50_p3)  ;;  %v202_v7 = vld [vmem:[%s175_s26 + $0x68] sm:$0xff] (%p50_p3) }
  0x15   : > { %201 = vst [vmem:[%s169_s27 + $0x30] sm:$0xff] %v200_v6  ;;  %203 = vst [vmem:[%s169_s27 + $0x38] sm:$0xff] %v202_v7 }
  0x16 PF: > { %p879_p6 = scmp.ge.s32.totalorder %s1129_s16, 1  ;;  %p220_p7 = scmp.lt.s32.totalorder %s1129_s16, 3 }
  0x18   : > { %p221_p8 = pnand %p879_p6, %p220_p7 }
  0x19   : > { %s227_s28 = sand.u32 (!%p221_p8), 1, %s1113_s12   ;;  %s881_s29 = sshll.u32 (!%p221_p8), %s1121_s14, 6 }
  0x1a   : > { %224 = sbr.rel (%p221_p8) target bundleno = 320 (0x140), region = 51  ;;  %s880_s30 = sshll.u32 (!%p221_p8), %s227_s28, 6 }
  0x1b   : > { %p267_p9 = scmp.lt.s32.totalorder (!%p221_p8), %s881_s29, 127  ;;  %s1204_s8 = scalar_lea.vmem (!%p221_p8), [#allocation3], %s880_s30 }
  0x1c   : > { %p883_p10 = scmp.ne.s32.totalorder (!%p221_p8), %s1121_s14, 0 }
  0x21   : > { %s1283_s29 = smov (!%p267_p9, %s881_s29), 127  ;;  %291 = sbr.rel (%p883_p10) target bundleno = 40 (0x28), region = 59 }
  0x22   : > { %s882_s4 = sshll.u32 %s1283_s29, 2  ;;  %v1131_v8 = vmov (!%p883_p10), 0.0  }
  0x23   : > { %s1202_s7 = scalar_lea.vmem %s1273_s1, %s882_s4  ;;  %292 = vst [vmem:[#allocation2] sm:$0xff] (!%p883_p10), %v1131_v8  ;;  %293 = vst [vmem:[#allocation2 + $0x8] sm:$0xff] (!%p883_p10), %v1131_v8 }
  0x24   : > { %294 = vst [vmem:[#allocation2 + $0x10] sm:$0xff] (!%p883_p10), %v1131_v8  ;;  %295 = vst [vmem:[#allocation2 + $0x18] sm:$0xff] (!%p883_p10), %v1131_v8 }
  0x28 PF: > { %v1047_v9 = vld [vmem:[%s1202_s7 + $0x40] sm:$0xff]   ;;  %v1051_v13 = vld [vmem:[%s1202_s7 + $0x48] sm:$0xff]   ;;  %v1055_v17 = vld [vmem:[%s1202_s7 + $0x50] sm:$0xff]   ;;  %p924_p11 = scmp.ne.s32.totalorder %s1121_s14, 1 }
  0x29   : > { %v1048_v10 = vld [vmem:[%s1202_s7 + $0xc0] sm:$0xff]   ;;  %950 = vmatprep.subr.bf16.mxu0 %v1047_v9  ;;  %v1052_v14 = vld [vmem:[%s1202_s7 + $0xc8] sm:$0xff]   ;;  %v1056_v18 = vld [vmem:[%s1202_s7 + $0xd0] sm:$0xff]  }
  0x2a   : > { %v1049_v11 = vld [vmem:[%s1202_s7] sm:$0xff]   ;;  %978 = vmatprep.subr.bf16.mxu1 %v1048_v10  ;;  %v1053_v15 = vld [vmem:[%s1202_s7 + $0x8] sm:$0xff]   ;;  %v1057_v19 = vld [vmem:[%s1202_s7 + $0x10] sm:$0xff]  }
  0x2b   : > { %v1050_v12 = vld [vmem:[%s1202_s7 + $0x80] sm:$0xff]   ;;  %951 = vmatpush3.bf16.msra.mxu0 %v1049_v11  ;;  %v1054_v16 = vld [vmem:[%s1202_s7 + $0x88] sm:$0xff]   ;;  %v1058_v20 = vld [vmem:[%s1202_s7 + $0x90] sm:$0xff]  }
  0x2c   : > { %979 = vmatpush3.bf16.msra.mxu1 %v1050_v12  ;;  %952 = vmatprep.subr.bf16.mxu0 %v1051_v13  ;;  %v1059_v21 = vld [vmem:[%s1202_s7 + $0x58] sm:$0xff]   ;;  %v1063_v25 = vld [vmem:[%s1202_s7 + $0x60] sm:$0xff]   ;;  %v1067_v29 = vld [vmem:[%s1202_s7 + $0x68] sm:$0xff]  }
  0x2d   : > { %980 = vmatprep.subr.bf16.mxu1 %v1052_v14  ;;  %v1060_v22 = vld [vmem:[%s1202_s7 + $0xd8] sm:$0xff]   ;;  %v1064_v26 = vld [vmem:[%s1202_s7 + $0xe0] sm:$0xff]   ;;  %v1068_v30 = vld [vmem:[%s1202_s7 + $0xe8] sm:$0xff]  }
  0x2e   : > { %v1061_v23 = vld [vmem:[%s1202_s7 + $0x18] sm:$0xff]   ;;  %v1065_v27 = vld [vmem:[%s1202_s7 + $0x20] sm:$0xff]   ;;  %v1069_v31 = vld [vmem:[%s1202_s7 + $0x28] sm:$0xff]  }
  0x2f   : > { %953 = vmatpush3.bf16.msra.mxu0 %v1053_v15  ;;  %v1062_v24 = vld [vmem:[%s1202_s7 + $0x98] sm:$0xff]   ;;  %v1066_v28 = vld [vmem:[%s1202_s7 + $0xa0] sm:$0xff]   ;;  %v1070_v32 = vld [vmem:[%s1202_s7 + $0xa8] sm:$0xff]  }
  0x30   : > { %981 = vmatpush3.bf16.msra.mxu1 %v1054_v16  ;;  %954 = vmatprep.subr.bf16.mxu0 %v1055_v17  ;;  %v1071_v33 = vld [vmem:[%s1202_s7 + $0x70] sm:$0xff]   ;;  %v1075_v37 = vld [vmem:[%s1202_s7 + $0x78] sm:$0xff]   ;;  %v296_v58 = vld [vmem:[#allocation2] sm:$0xff] }
  0x31   : > { %982 = vmatprep.subr.bf16.mxu1 %v1056_v18  ;;  %v1072_v34 = vld [vmem:[%s1202_s7 + $0xf0] sm:$0xff]   ;;  %v1076_v38 = vld [vmem:[%s1202_s7 + $0xf8] sm:$0xff]   ;;  %v297_v63 = vld [vmem:[#allocation2 + $0x8] sm:$0xff] }
  0x32   : > { %v1073_v35 = vld [vmem:[%s1202_s7 + $0x30] sm:$0xff]   ;;  %v1077_v39 = vld [vmem:[%s1202_s7 + $0x38] sm:$0xff]  }
  0x33   : > { %955 = vmatpush3.bf16.msra.mxu0 %v1057_v19  ;;  %v1074_v36 = vld [vmem:[%s1202_s7 + $0xb0] sm:$0xff]   ;;  %v1078_v40 = vld [vmem:[%s1202_s7 + $0xb8] sm:$0xff]  }
  0x34   : > { %983 = vmatpush3.bf16.msra.mxu1 %v1058_v20  ;;  %956 = vmatprep.subr.bf16.mxu0 %v1059_v21  ;;  %v1079_v41 = vld [vmem:[%s1204_s8] ss:$16 sps:$4 sm:$0xff]   ;;  %v1081_v42 = vld [vmem:[%s1204_s8 + $0x4] ss:$16 sps:$4 sm:$0xff]   ;;  %v1082_v43 = vld [vmem:[%s1204_s8 + $0x8] ss:$16 sps:$4 sm:$0xff]  }
  0x35   : > { %984 = vmatprep.subr.bf16.mxu1 %v1060_v22  ;;  %v1084_v44 = vld [vmem:[%s1204_s8 + $0xc] ss:$16 sps:$4 sm:$0xff]   ;;  %636 = vmatprep.mubr.bf16.mxu0 %v1081_v42  ;;  %v1085_v45 = vld [vmem:[%s1204_s8 + $0x24] ss:$16 sps:$4 sm:$0xff]   ;;  %v1089_v47 = vld [vmem:[%s1204_s8 + $0x20] ss:$16 sps:$4 sm:$0xff]  }
  0x36   : > { %685 = vmatprep.mubr.bf16.mxu1 %v1084_v44  ;;  %v1087_v46 = vld [vmem:[%s1204_s8 + $0x2c] ss:$16 sps:$4 sm:$0xff]   ;;  %v1090_v48 = vld [vmem:[%s1204_s8 + $0x28] ss:$16 sps:$4 sm:$0xff]   ;;  %v298_v12 = vld [vmem:[#allocation2 + $0x10] sm:$0xff] }
  0x37   : > { %957 = vmatpush3.bf16.msra.mxu0 %v1061_v23  ;;  %v299_v17 = vld [vmem:[#allocation2 + $0x18] sm:$0xff]  ;;  %v925_v23 = vld [vmem:[%s1274_s2] ss:$0 sm:$0xff] (!%p924_p11) }
  0x38   : > { %985 = vmatpush3.bf16.msra.mxu1 %v1062_v24  ;;  %958 = vmatprep.subr.bf16.mxu0 %v1063_v25 }
  0x39   : > { %986 = vmatprep.subr.bf16.mxu1 %v1064_v26 }
  0x3b   : > { %959 = vmatpush3.bf16.msra.mxu0 %v1065_v27 }
  0x3c   : > { %987 = vmatpush3.bf16.msra.mxu1 %v1066_v28  ;;  %960 = vmatprep.subr.bf16.mxu0 %v1067_v29 }
  0x3d   : > { %988 = vmatprep.subr.bf16.mxu1 %v1068_v30 }
  0x3f   : > { %961 = vmatpush3.bf16.msra.mxu0 %v1069_v31 }
  0x40   : > { %989 = vmatpush3.bf16.msra.mxu1 %v1070_v32  ;;  %962 = vmatprep.subr.bf16.mxu0 %v1071_v33 }
  0x41   : > { %990 = vmatprep.subr.bf16.mxu1 %v1072_v34 }
  0x43   : > { %963 = vmatpush3.bf16.msra.mxu0 %v1073_v35 }
  0x44   : > { %991 = vmatpush3.bf16.msra.mxu1 %v1074_v36  ;;  %964 = vmatprep.subr.bf16.mxu0 %v1075_v37 }
  0x45   : > { %992 = vmatprep.subr.bf16.mxu1 %v1076_v38 }
  0x47   : > { %965 = vmatpush3.bf16.msra.mxu0 %v1077_v39 }
  0x48   : > { %993 = vmatpush3.bf16.msra.mxu1 %v1078_v40 }
  0x4a   : > { %637 = vmatmul.mubr.bf16.vlgmr.msra.gmra.mrb[0].mxu0 %v1079_v41 }
  0x4b   : > { %686 = vmatmul.mubr.bf16.vlgmr.msra.gmra.mrb[0].mxu1 %v1082_v43  ;;  %644 = vmatprep.mubr.bf16.mxu0 %v1085_v45 }
  0x4c   : > { %693 = vmatprep.mubr.bf16.mxu1 %v1087_v46 }
  0x52   : > { %645 = vmatmul.mubr.bf16.gmra.mrb[4].mxu0 %v1089_v47 }
  0x53   : > { %694 = vmatmul.mubr.bf16.gmra.mrb[4].mxu1 %v1090_v48 }
 0x11d   : > { %v966_v49 = vpop.f32.mrb[0].mxu0 }
 0x11e   : > { %v994_v50 = vpop.f32.mrb[0].mxu1  ;;  %v967_v51 = vpop.f32.mrb[1].mxu0 }
 0x11f   : > { %v968_v52 = vadd.f32 %v967_v51, %v966_v49  ;;  %v995_v53 = vpop.f32.mrb[1].mxu1  ;;  %v969_v54 = vpop.f32.mrb[2].mxu0 }
 0x120   : > { %v996_v55 = vadd.f32 %v995_v53, %v994_v50  ;;  %v997_v56 = vpop.f32.mrb[2].mxu1  ;;  %v970_v57 = vpop.f32.mrb[3].mxu0 }
 0x121   : > { %v971_v59 = vadd.f32 %v970_v57, %v969_v54  ;;  %v998_v60 = vpop.f32.mrb[3].mxu1 }
 0x122   : > { %v688_v61 = vadd.f32 %v996_v55, %v968_v52  ;;  %v999_v62 = vadd.f32 %v998_v60, %v997_v56 }
 0x124   : > { %v702_v0 = vadd.f32 %v688_v61, %v296_v58  ;;  %v691_v1 = vadd.f32 %v999_v62, %v971_v59 }
 0x125   : > { %v972_v2 = vpop.f32.mrb[4].mxu0 }
 0x126   : > { %706 = vst [vmem:[#allocation2] sm:$0xff] %v702_v0  ;;  %v703_v3 = vadd.f32 %v691_v1, %v297_v63  ;;  %v1000_v4 = vpop.f32.mrb[4].mxu1  ;;  %v973_v5 = vpop.f32.mrb[5].mxu0 }
 0x127   : > { %v974_v6 = vadd.f32 %v973_v5, %v972_v2  ;;  %v1001_v7 = vpop.f32.mrb[5].mxu1  ;;  %v975_v8 = vpop.f32.mrb[6].mxu0 }
 0x128   : > { %707 = vst [vmem:[#allocation2 + $0x8] sm:$0xff] %v703_v3  ;;  %v1002_v9 = vadd.f32 %v1001_v7, %v1000_v4  ;;  %v1003_v10 = vpop.f32.mrb[6].mxu1  ;;  %v976_v11 = vpop.f32.mrb[7].mxu0 }
 0x129   : > { %v977_v13 = vadd.f32 %v976_v11, %v975_v8  ;;  %v1004_v14 = vpop.f32.mrb[7].mxu1 }
 0x12a   : > { %v696_v15 = vadd.f32 %v1002_v9, %v974_v6  ;;  %v1005_v16 = vadd.f32 %v1004_v14, %v1003_v10  ;;  %713 = sbr.rel (%p924_p11) target bundleno = 320 (0x140), region = 63 }
 0x12c   : > { %v704_v18 = vadd.f32 %v696_v15, %v298_v12  ;;  %v699_v19 = vadd.f32 %v1005_v16, %v977_v13 }
 0x12d   : > { %v714_v21 = vld [vmem:[#allocation2] sm:$0xff] (!%p924_p11) }
 0x12e   : > { %708 = vst [vmem:[#allocation2 + $0x10] sm:$0xff] %v704_v18  ;;  %v705_v20 = vadd.f32 %v699_v19, %v299_v17  ;;  %v725_v24 = vadd.f32 (!%p924_p11), %v925_v23, %v714_v21 }
 0x12f   : > { %v715_v22 = vld [vmem:[#allocation2 + $0x8] sm:$0xff] (!%p924_p11) }
 0x130   : > { %709 = vst [vmem:[#allocation2 + $0x18] sm:$0xff] %v705_v20  ;;  %v726_v25 = vadd.f32 (!%p924_p11), %v925_v23, %v715_v22  ;;  %vm729_vm0 = vcmp.ge.f32.partialorder (!%p924_p11), %v725_v24, 0.0  ;;  %v733_v30 = vmul.f32 (!%p924_p11), 0.2, %v725_v24 }
 0x132   : > { %vm730_vm1 = vcmp.ge.f32.partialorder %v726_v25, 0.0  ;;  %v734_v31 = vmul.f32 0.2, %v726_v25  ;;  %v737_v34 = vsel %vm729_vm0, %v725_v24, %v733_v30 }
 0x134   : > { %v738_v35 = vsel %vm730_vm1, %v726_v25, %v734_v31 }
 0x135   : > { %v716_v26 = vld [vmem:[#allocation2 + $0x10] sm:$0xff]  ;;  %v942_v36 = vpack.c.bf16 %v738_v35, %v737_v34 }
 0x136   : > { %v727_v28 = vadd.f32 %v925_v23, %v716_v26 }
 0x137   : > { %v717_v27 = vld [vmem:[#allocation2 + $0x18] sm:$0xff]  ;;  %943 = vst [vmem:[%s1275_s3] sm:$0xff] %v942_v36  }
 0x138   : > { %v728_v29 = vadd.f32 %v925_v23, %v717_v27  ;;  %vm731_vm2 = vcmp.ge.f32.partialorder %v727_v28, 0.0  ;;  %v735_v32 = vmul.f32 0.2, %v727_v28 }
 0x13a   : > { %vm732_vm3 = vcmp.ge.f32.partialorder %v728_v29, 0.0  ;;  %v736_v33 = vmul.f32 0.2, %v728_v29  ;;  %v739_v37 = vsel %vm731_vm2, %v727_v28, %v735_v32 }
 0x13c   : > { %v740_v38 = vsel %vm732_vm3, %v728_v29, %v736_v33 }
 0x13d   : > { %v947_v39 = vpack.c.bf16 %v740_v38, %v739_v37 }
 0x13f   : > { %949 = vst [vmem:[%s1275_s3 + $0x8] sm:$0xff] %v947_v39  }
 0x140 PF: > { %s13_s16 = sadd.s32 1, %s1129_s16   ;;  %s1276_s12 = smov %s1117_s13 }
 0x141   : > { %p10_p12 = scmp.ge.s32.totalorder %s13_s16, 4   ;;  %s1277_s13 = smov %s1187_s20 }
 0x142   : > { %s1278_s14 = smov %s1125_s15  ;;  %s1279_s15 = smov %s1281_s17 }
 0x143   :  { %12 = sbr.rel (!%p10_p12) target bundleno = 3 (0x3), region = 104 }

// kernel: _lambda_.6
= control target key start
LH: loop header
LB: loop body
LE: loop exit
PB: predicated region body
PF: predicated region fallthrough
CT: control target
= control target key end

     0   :  { %s1038_s12 = smov 0   ;;  %s1040_s13 = smov 0   ;;  %s1151_s0 = inlined_call_operand.vmem [shape: bf16[16,2048], index: 0, kind: input, shape index: {}]   ;;  %s1152_s1 = inlined_call_operand.vmem [shape: bf16[2048,128], index: 1, kind: input, shape index: {}]   ;;  %s1153_s2 = inlined_call_operand.vmem [shape: f32[1,128], index: 2, kind: input, shape index: {}]   ;;  %s1154_s3 = inlined_call_operand.vmem [shape: bf16[16,128], index: 3, kind: output, shape index: {}]  }
   0x1   :  { %s1042_s14 = smov 0   ;;  %s1044_s15 = smov 0  }
   0x2   :  { %s1046_s16 = smov 0  }
   0x3 LB: > { %s25_s17 = sadd.s32 1, %s1011_s15  ;;  %p48_p1 = scmp.ne.s32.totalorder %s1003_s13, %s999_s12  ;;  %s1015_s16 = sphi %s1046_s16, %s13_s16   ;;  %s1011_s15 = sphi %s1044_s15, %s1158_s15   ;;  %s1007_s14 = sphi %s1042_s14, %s1157_s14   ;;  %s1003_s13 = sphi %s1040_s13, %s1156_s13   ;;  %s999_s12 = sphi %s1038_s12, %s1155_s12  }
   0x4   : > { %p26_p0 = scmp.ge.s32.totalorder %s25_s17, 4  ;;  %p49_p2 = scmp.eq.s32.totalorder %s1015_s16, 0 }
   0x5   : > { %s41_s19 = sadd.s32 1, %s1003_s13  ;;  %p793_p5 = scmp.ge.s32.totalorder %s1015_s16, 4 }
   0x6   : > { %s1160_s17 = smov (%p26_p0, %s25_s17), 0  ;;  %p50_p3 = por %p49_p2, %p48_p1 }
   0x7   : > { %s37_s18 = ssub.s32 %s1011_s15, %s1160_s17  ;;  %162 = sbr.rel (%p793_p5) target bundleno = 21 (0x15), region = 20 }
   0x8   : > { %p39_p4 = scmp.eq.s32.totalorder %s37_s18, 0 }
   0xa   : > { %s1073_s20 = scalar_select %p39_p4, %s1003_s13, %s41_s19  }
   0xe   : > { %165 = sbr.rel (!%p50_p3) target bundleno = 21 (0x15), region = 24  ;;  %s167_s21 = sand.u32 (%p50_p3), 1, %s1003_s13  }
   0xf   : > { %s846_s22 = sshll.u32 (%p50_p3), %s1011_s15, 4  ;;  %s794_s23 = sshll.u32 (%p50_p3), %s167_s21, 5 }
  0x10   : > { %s175_s26 = scalar_lea.vmem (%p50_p3), %s1151_s0, %s846_s22  ;;  %s169_s27 = scalar_lea.vmem (%p50_p3), [#allocation3], %s794_s23 }
  0x11   : > { %v188_v0 = vld [vmem:[%s175_s26] sm:$0xff] (%p50_p3)  ;;  %v190_v1 = vld [vmem:[%s175_s26 + $0x8] sm:$0xff] (%p50_p3) }
  0x12   : > { %v192_v2 = vld [vmem:[%s175_s26 + $0x40] sm:$0xff] (%p50_p3)  ;;  %189 = vst [vmem:[%s169_s27] sm:$0xff] (%p50_p3), %v188_v0  ;;  %191 = vst [vmem:[%s169_s27 + $0x8] sm:$0xff] (%p50_p3), %v190_v1  ;;  %v194_v3 = vld [vmem:[%s175_s26 + $0x48] sm:$0xff] (%p50_p3) }
  0x13   : > { %193 = vst [vmem:[%s169_s27 + $0x10] sm:$0xff] (%p50_p3), %v192_v2  ;;  %195 = vst [vmem:[%s169_s27 + $0x18] sm:$0xff] (%p50_p3), %v194_v3 }
  0x15 PF: > { %p797_p6 = scmp.ge.s32.totalorder %s1015_s16, 1  ;;  %p212_p7 = scmp.lt.s32.totalorder %s1015_s16, 5 }
  0x17   : > { %p213_p8 = pnand %p797_p6, %p212_p7 }
  0x18   : > { %s219_s28 = sand.u32 (!%p213_p8), 1, %s999_s12   ;;  %s799_s29 = sshll.u32 (!%p213_p8), %s1007_s14, 6 }
  0x19   : > { %216 = sbr.rel (%p213_p8) target bundleno = 308 (0x134), region = 51  ;;  %s798_s30 = sshll.u32 (!%p213_p8), %s219_s28, 5 }
  0x1a   : > { %p259_p9 = scmp.lt.s32.totalorder (!%p213_p8), %s799_s29, 255  ;;  %s1090_s8 = scalar_lea.vmem (!%p213_p8), [#allocation3], %s798_s30 }
  0x1b   : > { %p801_p10 = scmp.ne.s32.totalorder (!%p213_p8), %s1007_s14, 0 }
  0x20   : > { %s1162_s29 = smov (!%p259_p9, %s799_s29), 255  ;;  %283 = sbr.rel (%p801_p10) target bundleno = 39 (0x27), region = 59 }
  0x21   : > { %s800_s4 = sshll.u32 %s1162_s29, 2  ;;  %v1017_v4 = vmov (!%p801_p10), 0.0  }
  0x22   : > { %s1088_s7 = scalar_lea.vmem %s1152_s1, %s800_s4  ;;  %284 = vst [vmem:[#allocation2] sm:$0xff] (!%p801_p10), %v1017_v4  ;;  %285 = vst [vmem:[#allocation2 + $0x8] sm:$0xff] (!%p801_p10), %v1017_v4 }
  0x27 PF: > { %v939_v5 = vld [vmem:[%s1088_s7 + $0x40] sm:$0xff]   ;;  %v943_v9 = vld [vmem:[%s1088_s7 + $0x48] sm:$0xff]   ;;  %v947_v13 = vld [vmem:[%s1088_s7 + $0x50] sm:$0xff]   ;;  %p838_p11 = scmp.ne.s32.totalorder %s1007_s14, 3 }
  0x28   : > { %v940_v6 = vld [vmem:[%s1088_s7 + $0xc0] sm:$0xff]   ;;  %854 = vmatprep.subr.bf16.mxu0 %v939_v5  ;;  %v944_v10 = vld [vmem:[%s1088_s7 + $0xc8] sm:$0xff]   ;;  %v948_v14 = vld [vmem:[%s1088_s7 + $0xd0] sm:$0xff]  }
  0x29   : > { %v941_v7 = vld [vmem:[%s1088_s7] sm:$0xff]   ;;  %876 = vmatprep.subr.bf16.mxu1 %v940_v6  ;;  %v945_v11 = vld [vmem:[%s1088_s7 + $0x8] sm:$0xff]   ;;  %v949_v15 = vld [vmem:[%s1088_s7 + $0x10] sm:$0xff]  }
  0x2a   : > { %v942_v8 = vld [vmem:[%s1088_s7 + $0x80] sm:$0xff]   ;;  %855 = vmatpush3.bf16.msra.mxu0 %v941_v7  ;;  %v946_v12 = vld [vmem:[%s1088_s7 + $0x88] sm:$0xff]   ;;  %v950_v16 = vld [vmem:[%s1088_s7 + $0x90] sm:$0xff]  }
  0x2b   : > { %877 = vmatpush3.bf16.msra.mxu1 %v942_v8  ;;  %856 = vmatprep.subr.bf16.mxu0 %v943_v9  ;;  %v951_v17 = vld [vmem:[%s1088_s7 + $0x58] sm:$0xff]   ;;  %v955_v21 = vld [vmem:[%s1088_s7 + $0x60] sm:$0xff]   ;;  %v959_v25 = vld [vmem:[%s1088_s7 + $0x68] sm:$0xff]  }
  0x2c   : > { %878 = vmatprep.subr.bf16.mxu1 %v944_v10  ;;  %v952_v18 = vld [vmem:[%s1088_s7 + $0xd8] sm:$0xff]   ;;  %v956_v22 = vld [vmem:[%s1088_s7 + $0xe0] sm:$0xff]   ;;  %v960_v26 = vld [vmem:[%s1088_s7 + $0xe8] sm:$0xff]  }
  0x2d   : > { %v953_v19 = vld [vmem:[%s1088_s7 + $0x18] sm:$0xff]   ;;  %v957_v23 = vld [vmem:[%s1088_s7 + $0x20] sm:$0xff]   ;;  %v961_v27 = vld [vmem:[%s1088_s7 + $0x28] sm:$0xff]  }
  0x2e   : > { %857 = vmatpush3.bf16.msra.mxu0 %v945_v11  ;;  %v954_v20 = vld [vmem:[%s1088_s7 + $0x98] sm:$0xff]   ;;  %v958_v24 = vld [vmem:[%s1088_s7 + $0xa0] sm:$0xff]   ;;  %v962_v28 = vld [vmem:[%s1088_s7 + $0xa8] sm:$0xff]  }
  0x2f   : > { %879 = vmatpush3.bf16.msra.mxu1 %v946_v12  ;;  %858 = vmatprep.subr.bf16.mxu0 %v947_v13  ;;  %v963_v29 = vld [vmem:[%s1088_s7 + $0x70] sm:$0xff]   ;;  %v967_v33 = vld [vmem:[%s1088_s7 + $0x78] sm:$0xff]   ;;  %v286_v50 = vld [vmem:[#allocation2] sm:$0xff] }
  0x30   : > { %880 = vmatprep.subr.bf16.mxu1 %v948_v14  ;;  %v964_v30 = vld [vmem:[%s1088_s7 + $0xf0] sm:$0xff]   ;;  %v968_v34 = vld [vmem:[%s1088_s7 + $0xf8] sm:$0xff]   ;;  %v287_v55 = vld [vmem:[#allocation2 + $0x8] sm:$0xff] }
  0x31   : > { %v965_v31 = vld [vmem:[%s1088_s7 + $0x30] sm:$0xff]   ;;  %v969_v35 = vld [vmem:[%s1088_s7 + $0x38] sm:$0xff]   ;;  %v839_v61 = vld [vmem:[%s1153_s2] ss:$0 sm:$0xff] (!%p838_p11) }
  0x32   : > { %859 = vmatpush3.bf16.msra.mxu0 %v949_v15  ;;  %v966_v32 = vld [vmem:[%s1088_s7 + $0xb0] sm:$0xff]   ;;  %v970_v36 = vld [vmem:[%s1088_s7 + $0xb8] sm:$0xff]  }
  0x33   : > { %881 = vmatpush3.bf16.msra.mxu1 %v950_v16  ;;  %860 = vmatprep.subr.bf16.mxu0 %v951_v17  ;;  %v971_v37 = vld [vmem:[%s1090_s8] ss:$16 sps:$4 sm:$0xff]   ;;  %v973_v38 = vld [vmem:[%s1090_s8 + $0x4] ss:$16 sps:$4 sm:$0xff]   ;;  %v974_v39 = vld [vmem:[%s1090_s8 + $0x8] ss:$16 sps:$4 sm:$0xff]  }
  0x34   : > { %882 = vmatprep.subr.bf16.mxu1 %v952_v18  ;;  %v976_v40 = vld [vmem:[%s1090_s8 + $0xc] ss:$16 sps:$4 sm:$0xff]   ;;  %600 = vmatprep.mubr.bf16.mxu0 %v973_v38 }
  0x35   : > { %641 = vmatprep.mubr.bf16.mxu1 %v976_v40 }
  0x36   : > { %861 = vmatpush3.bf16.msra.mxu0 %v953_v19 }
  0x37   : > { %883 = vmatpush3.bf16.msra.mxu1 %v954_v20  ;;  %862 = vmatprep.subr.bf16.mxu0 %v955_v21 }
  0x38   : > { %884 = vmatprep.subr.bf16.mxu1 %v956_v22 }
  0x3a   : > { %863 = vmatpush3.bf16.msra.mxu0 %v957_v23 }
  0x3b   : > { %885 = vmatpush3.bf16.msra.mxu1 %v958_v24  ;;  %864 = vmatprep.subr.bf16.mxu0 %v959_v25 }
  0x3c   : > { %886 = vmatprep.subr.bf16.mxu1 %v960_v26 }
  0x3e   : > { %865 = vmatpush3.bf16.msra.mxu0 %v961_v27 }
  0x3f   : > { %887 = vmatpush3.bf16.msra.mxu1 %v962_v28  ;;  %866 = vmatprep.subr.bf16.mxu0 %v963_v29 }
  0x40   : > { %888 = vmatprep.subr.bf16.mxu1 %v964_v30 }
  0x42   : > { %867 = vmatpush3.bf16.msra.mxu0 %v965_v31 }
  0x43   : > { %889 = vmatpush3.bf16.msra.mxu1 %v966_v32  ;;  %868 = vmatprep.subr.bf16.mxu0 %v967_v33 }
  0x44   : > { %890 = vmatprep.subr.bf16.mxu1 %v968_v34 }
  0x46   : > { %869 = vmatpush3.bf16.msra.mxu0 %v969_v35 }
  0x47   : > { %891 = vmatpush3.bf16.msra.mxu1 %v970_v36 }
  0x49   : > { %601 = vmatmul.mubr.bf16.vlgmr.msra.gmra.mrb[0].mxu0 %v971_v37 }
  0x4a   : > { %642 = vmatmul.mubr.bf16.vlgmr.msra.gmra.mrb[0].mxu1 %v974_v39 }
 0x11c   : > { %v870_v41 = vpop.f32.mrb[0].mxu0 }
 0x11d   : > { %v892_v42 = vpop.f32.mrb[0].mxu1  ;;  %v871_v43 = vpop.f32.mrb[1].mxu0 }
 0x11e   : > { %v872_v44 = vadd.f32 %v871_v43, %v870_v41  ;;  %v893_v45 = vpop.f32.mrb[1].mxu1  ;;  %v873_v46 = vpop.f32.mrb[2].mxu0 }
 0x11f   : > { %v894_v47 = vadd.f32 %v893_v45, %v892_v42  ;;  %v895_v48 = vpop.f32.mrb[2].mxu1  ;;  %v874_v49 = vpop.f32.mrb[3].mxu0 }
 0x120   : > { %v875_v51 = vadd.f32 %v874_v49, %v873_v46  ;;  %v896_v52 = vpop.f32.mrb[3].mxu1 }
 0x121   : > { %v644_v53 = vadd.f32 %v894_v47, %v872_v44  ;;  %v897_v54 = vadd.f32 %v896_v52, %v895_v48  ;;  %657 = sbr.rel (%p838_p11) target bundleno = 308 (0x134), region = 63 }
 0x123   : > { %v650_v56 = vadd.f32 %v644_v53, %v286_v50  ;;  %v647_v57 = vadd.f32 %v897_v54, %v875_v51 }
 0x125   : > { %652 = vst [vmem:[#allocation2] sm:$0xff] %v650_v56  ;;  %v651_v58 = vadd.f32 %v647_v57, %v287_v55 }
 0x127   : > { %653 = vst [vmem:[#allocation2 + $0x8] sm:$0xff] %v651_v58 }
 0x12c   : > { %v658_v59 = vld [vmem:[#allocation2] sm:$0xff] }
 0x12d   : > { %v667_v62 = vadd.f32 %v839_v61, %v658_v59 }
 0x12e   : > { %v659_v60 = vld [vmem:[#allocation2 + $0x8] sm:$0xff] }
 0x12f   : > { %v668_v63 = vadd.f32 %v839_v61, %v659_v60 }
 0x131   : > { %v852_v0 = vpack.c.bf16 %v668_v63, %v667_v62 }
 0x133   : > { %853 = vst [vmem:[%s1154_s3] sm:$0xff] %v852_v0  }
 0x134 PF: > { %s13_s16 = sadd.s32 1, %s1015_s16   ;;  %s1155_s12 = smov %s1003_s13 }
 0x135   : > { %p10_p12 = scmp.ge.s32.totalorder %s13_s16, 6   ;;  %s1156_s13 = smov %s1073_s20 }
 0x136   : > { %s1157_s14 = smov %s1011_s15  ;;  %s1158_s15 = smov %s1160_s17 }
 0x137   :  { %12 = sbr.rel (!%p10_p12) target bundleno = 3 (0x3), region = 104 }

// kernel: _lambda_.7
= control target key start
LH: loop header
LB: loop body
LE: loop exit
PB: predicated region body
PF: predicated region fallthrough
CT: control target
= control target key end

     0   :  { %s881_s12 = smov 0   ;;  %s883_s13 = smov 0   ;;  %s982_s0 = inlined_call_operand.vmem [shape: bf16[16,128], index: 0, kind: input, shape index: {}]   ;;  %s983_s1 = inlined_call_operand.vmem [shape: bf16[128,1024], index: 1, kind: input, shape index: {}]   ;;  %s984_s2 = inlined_call_operand.vmem [shape: f32[1,1024], index: 2, kind: input, shape index: {}]   ;;  %s985_s3 = inlined_call_operand.vmem [shape: f32[16,1024], index: 3, kind: output, shape index: {}]  }
   0x1   :  { %s885_s14 = smov 0   ;;  %s887_s15 = smov 0  }
   0x2   :  { %s889_s16 = smov 0  }
   0x3 LB: > { %s28_s17 = sadd.s32 1, %s854_s15  ;;  %s702_s18 = sadd.s32 4294967295, %s858_s16   ;;  %s858_s16 = sphi %s889_s16, %s13_s16   ;;  %s854_s15 = sphi %s887_s15, %s990_s15   ;;  %s850_s14 = sphi %s885_s14, %s989_s14   ;;  %s846_s13 = sphi %s883_s13, %s988_s13   ;;  %s842_s12 = sphi %s881_s12, %s987_s12  }
   0x4   : > { %p30_p0 = scmp.ge.s32.totalorder %s28_s17, 4  ;;  %p76_p1 = scmp.ne.s32.totalorder %s846_s13, %s842_s12 }
   0x5   : > { %p77_p2 = scmp.eq.s32.totalorder %s858_s16, 0  ;;  %p134_p4 = scmp.eq.s32.totalorder %s702_s18, 3 }
   0x6   : > { %s992_s17 = smov (%p30_p0, %s28_s17), 0  ;;  %s69_s20 = sadd.s32 1, %s846_s13 }
   0x7   : > { %p78_p3 = por %p77_p2, %p76_p1  ;;  %s65_s19 = ssub.s32 %s854_s15, %s992_s17 }
   0x8   : > { %p67_p5 = scmp.eq.s32.totalorder %s65_s19, 0  ;;  %p916_p6 = por %p134_p4, %p76_p1 }
   0x9   : > { %p706_p7 = scmp.ge.s32.totalorder %s858_s16, 4 }
   0xa   : > { %s921_s22 = scalar_select %p67_p5, %s846_s13, %s69_s20  }
   0xb   : > { %168 = sbr.rel (%p706_p7) target bundleno = 38 (0x26), region = 20 }
  0x12   : > { %171 = sbr.rel (!%p78_p3) target bundleno = 38 (0x26), region = 24  ;;  %s173_s23 = sand.u32 (%p78_p3), 1, %s846_s13  }
  0x13   : > { %s736_s24 = sshll.u32 (%p78_p3), %s854_s15, 3  ;;  %s707_s25 = sshll.u32 (%p78_p3), %s173_s23, 7 }
  0x14   : > { %s929_s28 = scalar_lea.vmem (%p78_p3), %s983_s1, %s736_s24  ;;  %s175_s29 = scalar_lea.vmem (%p78_p3), [#allocation3], %s707_s25 }
  0x15   : > { %v239_v0 = vld [vmem:[%s929_s28] sm:$0xff] (%p78_p3) }
  0x16   : > { %v241_v1 = vld [vmem:[%s929_s28 + $0x20] sm:$0xff] (%p78_p3)  ;;  %240 = vst [vmem:[%s175_s29] sm:$0xff] (%p78_p3), %v239_v0 }
  0x17   : > { %v243_v2 = vld [vmem:[%s929_s28 + $0x40] sm:$0xff] (%p78_p3)  ;;  %242 = vst [vmem:[%s175_s29 + $0x8] sm:$0xff] (%p78_p3), %v241_v1 }
  0x18   : > { %244 = vst [vmem:[%s175_s29 + $0x10] sm:$0xff] (%p78_p3), %v243_v2  ;;  %v245_v3 = vld [vmem:[%s929_s28 + $0x60] sm:$0xff] (%p78_p3) }
  0x19   : > { %v247_v4 = vld [vmem:[%s929_s28 + $0x80] sm:$0xff]  ;;  %246 = vst [vmem:[%s175_s29 + $0x18] sm:$0xff] %v245_v3 }
  0x1a   : > { %v249_v5 = vld [vmem:[%s929_s28 + $0xa0] sm:$0xff]  ;;  %248 = vst [vmem:[%s175_s29 + $0x20] sm:$0xff] %v247_v4 }
  0x1b   : > { %250 = vst [vmem:[%s175_s29 + $0x28] sm:$0xff] %v249_v5  ;;  %v251_v6 = vld [vmem:[%s929_s28 + $0xc0] sm:$0xff] }
  0x1c   : > { %v253_v7 = vld [vmem:[%s929_s28 + $0xe0] sm:$0xff]  ;;  %252 = vst [vmem:[%s175_s29 + $0x30] sm:$0xff] %v251_v6 }
  0x1d   : > { %v255_v8 = vld [vmem:[%s929_s28 + $0x100] sm:$0xff]  ;;  %254 = vst [vmem:[%s175_s29 + $0x38] sm:$0xff] %v253_v7 }
  0x1e   : > { %256 = vst [vmem:[%s175_s29 + $0x40] sm:$0xff] %v255_v8  ;;  %v257_v9 = vld [vmem:[%s929_s28 + $0x120] sm:$0xff] }
  0x1f   : > { %v259_v10 = vld [vmem:[%s929_s28 + $0x140] sm:$0xff]  ;;  %258 = vst [vmem:[%s175_s29 + $0x48] sm:$0xff] %v257_v9 }
  0x20   : > { %v261_v11 = vld [vmem:[%s929_s28 + $0x160] sm:$0xff]  ;;  %260 = vst [vmem:[%s175_s29 + $0x50] sm:$0xff] %v259_v10 }
  0x21   : > { %262 = vst [vmem:[%s175_s29 + $0x58] sm:$0xff] %v261_v11  ;;  %v263_v12 = vld [vmem:[%s929_s28 + $0x180] sm:$0xff] }
  0x22   : > { %v265_v13 = vld [vmem:[%s929_s28 + $0x1a0] sm:$0xff]  ;;  %264 = vst [vmem:[%s175_s29 + $0x60] sm:$0xff] %v263_v12 }
  0x23   : > { %v267_v14 = vld [vmem:[%s929_s28 + $0x1c0] sm:$0xff]  ;;  %266 = vst [vmem:[%s175_s29 + $0x68] sm:$0xff] %v265_v13 }
  0x24   : > { %268 = vst [vmem:[%s175_s29 + $0x70] sm:$0xff] %v267_v14  ;;  %v269_v15 = vld [vmem:[%s929_s28 + $0x1e0] sm:$0xff] }
  0x25   : > { %270 = vst [vmem:[%s175_s29 + $0x78] sm:$0xff] %v269_v15 }
  0x26 PF: > { %p710_p8 = scmp.ge.s32.totalorder %s858_s16, 1  ;;  %p283_p9 = scmp.lt.s32.totalorder %s858_s16, 5 }
  0x28   : > { %p284_p10 = pnand %p710_p8, %p283_p9 }
  0x29   : > { %s290_s30 = sand.u32 (!%p284_p10), 1, %s842_s12   ;;  %v860_v16 = vmov (!%p284_p10), 0   ;;  %v803_v33 = vld [vmem:[%s982_s0] sm:$0xff] (!%p284_p10)   ;;  %s713_s8 = sshll.u32 (!%p284_p10), %s850_s14, 1  ;;  %v519_v34 = vlaneseq (!%p284_p10) }
  0x2a   : > { %287 = sbr.rel (%p284_p10) target bundleno = 335 (0x14f), region = 66  ;;  %s711_s4 = sshll.u32 (!%p284_p10), %s290_s30, 7  ;;  %491 = vmatprep.mubr.bf16.mxu0 (!%p284_p10), %v860_v16 }
  0x2b   : > { %s292_s5 = scalar_lea.vmem (!%p284_p10), [#allocation3], %s711_s4  ;;  %p336_p11 = scmp.lt.s32.totalorder (!%p284_p10), %s713_s8, 7  ;;  %v520_v35 = vshrl.u32 (!%p284_p10), %v519_v34, 7 }
  0x2c   : > { %v779_v17 = vld [vmem:[%s292_s5 + $0x4] ss:$8 sps:$4 sm:$0xff] (!%p284_p10)   ;;  %v781_v18 = vld [vmem:[%s292_s5] ss:$8 sps:$4 sm:$0xff] (!%p284_p10)   ;;  %v782_v19 = vld [vmem:[%s292_s5 + $0x14] ss:$8 sps:$4 sm:$0xff] (!%p284_p10)  }
  0x2d   : > { %459 = vmatprep.subr.bf16.mxu0 (!%p284_p10), %v779_v17  ;;  %v784_v20 = vld [vmem:[%s292_s5 + $0x10] ss:$8 sps:$4 sm:$0xff] (!%p284_p10)   ;;  %v785_v21 = vld [vmem:[%s292_s5 + $0x24] ss:$8 sps:$4 sm:$0xff] (!%p284_p10)   ;;  %v787_v22 = vld [vmem:[%s292_s5 + $0x20] ss:$8 sps:$4 sm:$0xff] (!%p284_p10)  }
  0x2e   : > { %460 = vmatpush1.bf16.msra.mxu0 (!%p284_p10), %v781_v18  ;;  %v788_v23 = vld [vmem:[%s292_s5 + $0x34] ss:$8 sps:$4 sm:$0xff] (!%p284_p10)   ;;  %v790_v24 = vld [vmem:[%s292_s5 + $0x30] ss:$8 sps:$4 sm:$0xff] (!%p284_p10)   ;;  %v791_v25 = vld [vmem:[%s292_s5 + $0x44] ss:$8 sps:$4 sm:$0xff] (!%p284_p10)  }
  0x2f   : > { %461 = vmatprep.subr.bf16.mxu0 (!%p284_p10), %v782_v19  ;;  %v793_v26 = vld [vmem:[%s292_s5 + $0x40] ss:$8 sps:$4 sm:$0xff] (!%p284_p10)   ;;  %v794_v27 = vld [vmem:[%s292_s5 + $0x54] ss:$8 sps:$4 sm:$0xff] (!%p284_p10)   ;;  %v796_v28 = vld [vmem:[%s292_s5 + $0x50] ss:$8 sps:$4 sm:$0xff] (!%p284_p10)  }
  0x30   : > { %v797_v29 = vld [vmem:[%s292_s5 + $0x64] ss:$8 sps:$4 sm:$0xff] (!%p284_p10)   ;;  %v799_v30 = vld [vmem:[%s292_s5 + $0x60] ss:$8 sps:$4 sm:$0xff] (!%p284_p10)   ;;  %v800_v31 = vld [vmem:[%s292_s5 + $0x74] ss:$8 sps:$4 sm:$0xff] (!%p284_p10)  }
  0x31   : > { %v802_v32 = vld [vmem:[%s292_s5 + $0x70] ss:$8 sps:$4 sm:$0xff]   ;;  %s994_s8 = smov (!%p336_p11, %s713_s8), 7  ;;  %v521_v36 = vsub.s32 0, %v520_v35  ;;  %v525_v38 = vsub.s32 1, %v520_v35  ;;  %s712_s18 = sshll.u32 %s290_s30, 5 }
  0x32   : > { %462 = vmatpush1.bf16.msra.mxu0 %v784_v20  ;;  %s338_s11 = scalar_lea.vmem %s984_s2, %s994_s8  ;;  %s323_s19 = scalar_lea.vmem [#allocation4], %s712_s18 }
  0x33   : > { %463 = vmatprep.subr.bf16.mxu0 %v785_v21  ;;  %v517_v37 = vld [vmem:[%s338_s11] sm:$0x3]  ;;  %s737_s12 = sshll.u32 (%p916_p6), %s850_s14, 4 }
  0x34   : > { %v522_v39 = vrot.slane %v517_v37, %v521_v36  ;;  %v526_v40 = vrot.slane %v517_v37, %v525_v38  ;;  %s577_s24 = scalar_lea.vmem (%p916_p6), %s985_s3, %s737_s12 }
  0x36   : > { %464 = vmatpush1.bf16.msra.mxu0 %v787_v22 }
  0x37   : > { %465 = vmatprep.subr.bf16.mxu0 %v788_v23 }
  0x3a   : > { %466 = vmatpush1.bf16.msra.mxu0 %v790_v24 }
  0x3b   : > { %467 = vmatprep.subr.bf16.mxu0 %v791_v25 }
  0x3e   : > { %468 = vmatpush1.bf16.msra.mxu0 %v793_v26 }
  0x3f   : > { %469 = vmatprep.subr.bf16.mxu0 %v794_v27 }
  0x42   : > { %470 = vmatpush1.bf16.msra.mxu0 %v796_v28 }
  0x43   : > { %471 = vmatprep.subr.bf16.mxu0 %v797_v29 }
  0x46   : > { %472 = vmatpush1.bf16.msra.mxu0 %v799_v30 }
  0x47   : > { %473 = vmatprep.subr.bf16.mxu0 %v800_v31 }
  0x4a   : > { %474 = vmatpush1.bf16.msra.mxu0 %v802_v32 }
  0x4d   : > { %492 = vmatmul.mubr.bf16.vlgmr.msra.gmra.mrb[0].mxu0 %v803_v33 }
 0x120   : > { %v493_v41 = vpop.f32.mrb[0].mxu0 }
 0x121   : > { %v529_v42 = vadd.f32 %v522_v39, %v493_v41  ;;  %v495_v43 = vpop.f32.mrb[1].mxu0 }
 0x122   : > { %v530_v44 = vadd.f32 %v526_v40, %v495_v43  ;;  %v497_v45 = vpop.f32.mrb[2].mxu0 }
 0x123   : > { %v533_v46 = vsub.f32 0.0, %v529_v42  ;;  %v531_v47 = vadd.f32 %v522_v39, %v497_v45  ;;  %v499_v48 = vpop.f32.mrb[3].mxu0 }
 0x124   : > { %v534_v49 = vsub.f32 0.0, %v530_v44  ;;  %v532_v50 = vadd.f32 %v526_v40, %v499_v48 }
 0x125   : > { %v537_v51 = vmul.f32 1.442695, %v533_v46  ;;  %v535_v52 = vsub.f32 0.0, %v531_v47 }
 0x126   : > { %v539_v53 = vmul.f32 1.442695, %v534_v49  ;;  %v536_v54 = vsub.f32 0.0, %v532_v50 }
 0x127   : > { %804 = vpow2.f32 %v537_v51  ;;  %v541_v55 = vmul.f32 1.442695, %v535_v52 }
 0x128   : > { %806 = vpow2.f32 %v539_v53  ;;  %v543_v56 = vmul.f32 1.442695, %v536_v54 }
 0x129   : > { %808 = vpow2.f32 %v541_v55 }
 0x12a   : > { %810 = vpow2.f32 %v543_v56 }
 0x131   : > { %v805_v57 = vpop.eup %804 }
 0x132   : > { %v807_v58 = vpop.eup %806  ;;  %v545_v59 = vadd.f32 1.0, %v805_v57 }
 0x133   : > { %v809_v60 = vpop.eup %808  ;;  %v546_v61 = vadd.f32 1.0, %v807_v58 }
 0x134   : > { %v811_v62 = vpop.eup %810  ;;  %812 = vrcp.f32 %v545_v59  ;;  %v547_v63 = vadd.f32 1.0, %v809_v60 }
 0x135   : > { %814 = vrcp.f32 %v546_v61  ;;  %v548_v0 = vadd.f32 1.0, %v811_v62 }
 0x136   : > { %816 = vrcp.f32 %v547_v63 }
 0x137   : > { %818 = vrcp.f32 %v548_v0 }
 0x13e   : > { %v813_v1 = vpop.eup %812 }
 0x13f   : > { %v815_v2 = vpop.eup %814  ;;  %v553_v3 = vmax.f32 %v813_v1, 0.0 }
 0x140   : > { %v817_v4 = vpop.eup %816  ;;  %v554_v5 = vmax.f32 %v815_v2, 0.0  ;;  %571 = sbr.rel (!%p916_p6) target bundleno = 335 (0x14f), region = 82 }
 0x141   : > { %v819_v6 = vpop.eup %818  ;;  %v557_v7 = vmin.f32 %v553_v3, 1.0  ;;  %v555_v8 = vmax.f32 %v817_v4, 0.0 }
 0x142   : > { %v558_v9 = vmin.f32 %v554_v5, 1.0  ;;  %v556_v10 = vmax.f32 %v819_v6, 0.0 }
 0x143   : > { %561 = vst [vmem:[%s323_s19] sm:$0xff] %v557_v7  ;;  %v559_v11 = vmin.f32 %v555_v8, 1.0 }
 0x144   : > { %562 = vst [vmem:[%s323_s19 + $0x8] sm:$0xff] %v558_v9  ;;  %v560_v12 = vmin.f32 %v556_v10, 1.0 }
 0x145   : > { %563 = vst [vmem:[%s323_s19 + $0x10] sm:$0xff] %v559_v11 }
 0x146   : > { %564 = vst [vmem:[%s323_s19 + $0x18] sm:$0xff] %v560_v12 }
 0x14a   : > { %v590_v13 = vld [vmem:[%s323_s19] sm:$0xff] }
 0x14b   : > { %v592_v14 = vld [vmem:[%s323_s19 + $0x8] sm:$0xff]  ;;  %591 = vst [vmem:[%s577_s24] sm:$0xff] %v590_v13 }
 0x14c   : > { %v594_v15 = vld [vmem:[%s323_s19 + $0x10] sm:$0xff]  ;;  %593 = vst [vmem:[%s577_s24 + $0x8] sm:$0xff] %v592_v14 }
 0x14d   : > { %v596_v16 = vld [vmem:[%s323_s19 + $0x18] sm:$0xff]  ;;  %595 = vst [vmem:[%s577_s24 + $0x40] sm:$0xff] %v594_v15 }
 0x14e   : > { %597 = vst [vmem:[%s577_s24 + $0x48] sm:$0xff] %v596_v16 }
 0x14f PF: > { %s13_s16 = sadd.s32 1, %s858_s16   ;;  %s987_s12 = smov %s846_s13 }
 0x150   : > { %p10_p12 = scmp.ge.s32.totalorder %s13_s16, 6   ;;  %s988_s13 = smov %s921_s22 }
 0x151   : > { %s989_s14 = smov %s854_s15  ;;  %s990_s15 = smov %s992_s17 }
 0x152   :  { %12 = sbr.rel (!%p10_p12) target bundleno = 3 (0x3), region = 142 }

</bundles_post_ra>
